<compile_context>
chip_gen: v5e
topology: v5e:2x2
jax: 0.10.0
libtpu: 0.0.40
codegen_flags: <defaults>
</compile_context>

<pallas_src>
import functools

import jax
import jax.numpy as jnp
from jax.experimental import pallas as pl
from jax.experimental.pallas import tpu as pltpu


_VMEM = pl.BlockSpec(memory_space=pltpu.MemorySpace.VMEM)


# ----------------------------------------------------------------------------
# The single fused Pallas kernel
# ----------------------------------------------------------------------------
def _fused_kernel(xt_ref, w1s_ref, bias_ref, *rest,
                  use_vip, n_batch, h_out, w_out, sp):
    """Whole CNN_switch_2L forward on lane-dense activations A[(ho, n), (wo, c)].

    inputs (all VMEM, bf16 unless noted):
      xt    (N*Ho, 5*sz)        five row-shifted input windows stacked on lanes
      w1s   (5*sz, Wo*16)       cnn_1 taps folded into one banded matrix
      bias  (8, Wo*16) f32      packed bias rows (conv1/vip1/vipb1/fc1/vip2/vipb2/out)
      [w2b  (sp, Wo*16, Wo*vip)  vip1 banded weights, one per H tap]
      [w3b  (sp, Wo*vip, Wo*16)  vip_back1 banded weights]
      fc1w  (Ho, Wo*16, 64)     fc1 with the NCHW flatten folded into its rows
      fcw   (192, 64)           [vip2.T | vip_back2.T | out.T], zero padded
    scratch (only when use_vip): zero-padded f32 row buffers for the H shifts.
    """
    if use_vip:
        (w2b_ref, w3b_ref, fc1w_ref, fcw_ref, o_ref, cpad_ref, ypad_ref) = rest
    else:
        (fc1w_ref, fcw_ref, o_ref) = rest
    f32, bf16 = jnp.float32, jnp.bfloat16
    rows = n_batch * h_out
    pad = (sp - 1) // 2

    # ---- cnn_1 (valid 5x5 conv): ONE wide-K matmul (K = 5*sz) --------------
    conv1 = jnp.dot(xt_ref[...], w1s_ref[...], preferred_element_type=f32)
    conv1 = conv1 + bias_ref[0:1, :]               # pre-ReLU (residual input)

    if use_vip:
        p0 = (cpad_ref.shape[0] - rows) // 2       # 8-aligned top pad rows
        nvip = w2b_ref.shape[2] // w_out

        # 'same' conv H taps == static row shifts of the (ho, n)-major stack:
        # write once into a zero-padded scratch, read one shifted window per
        # tap (replaces the old selection matmuls; exact, no MXU work).
        cpad_ref[...] = jnp.zeros_like(cpad_ref)
        cpad_ref[p0:p0 + rows, :] = conv1
        acc2 = jnp.zeros((rows, w_out * nvip), f32)
        for kh in range(sp):
            off = p0 + (kh - pad) * n_batch
            win = cpad_ref[off:off + rows, :].astype(bf16)
            acc2 = acc2 + jnp.dot(win, w2b_ref[kh], preferred_element_type=f32)
        y1 = jnp.maximum(acc2 + bias_ref[1:2, 0:w_out * nvip], 0.0)

        ypad_ref[...] = jnp.zeros_like(ypad_ref)
        ypad_ref[p0:p0 + rows, :] = y1
        acc3 = jnp.zeros((rows, w_out * 16), f32)
        for kh in range(sp):
            off = p0 + (kh - pad) * n_batch
            win = ypad_ref[off:off + rows, :].astype(bf16)
            acc3 = acc3 + jnp.dot(win, w3b_ref[kh], preferred_element_type=f32)
        conv_out = conv1 + acc3 + bias_ref[2:3, :]
    else:
        conv_out = conv1
    conv_out = jnp.maximum(conv_out, 0.0)          # (N*Ho, Wo*16) f32

    # ---- fc1 consumes the conv layout directly: Ho accumulating dots -------
    hid = jnp.zeros((n_batch, 64), f32)
    for h in range(h_out):
        slab = conv_out[h * n_batch:(h + 1) * n_batch, :].astype(bf16)
        hid = hid + jnp.dot(slab, fc1w_ref[h], preferred_element_type=f32)
    hid = hid + bias_ref[3:4, 0:64]

    # ---- vip2 / vip_back2 / out on the packed, zero-padded small weights ---
    if use_vip:
        y3 = jnp.maximum(
            jnp.dot(hid.astype(bf16), fcw_ref[0:64, :], preferred_element_type=f32)
            + bias_ref[4:5, 0:64], 0.0)
        hid = (hid
               + jnp.dot(y3.astype(bf16), fcw_ref[64:128, :],
                         preferred_element_type=f32)
               + bias_ref[5:6, 0:64])
    hid = jnp.maximum(hid, 0.0)
    logits = (jnp.dot(hid.astype(bf16), fcw_ref[128:192, :],
                      preferred_element_type=f32) + bias_ref[6:7, 0:64])
    o_ref[...] = logits[:, :o_ref.shape[1]].astype(o_ref.dtype)


# ----------------------------------------------------------------------------
# One-time weight re-layout (runs eagerly, outside the hot path)
# ----------------------------------------------------------------------------
def _band_weights(w, w_in, w_out, pad_w):
    """w: (KH, KW, Cin, Cout) -> (KH, w_in*Cin, w_out*Cout) banded matrices.

    band[kh, wi*Cin+ci, wo*Cout+co] = w[kh, wi-wo+pad_w, ci, co] when that kw
    index is in range, else 0 -- all (kw, ci) taps of one kernel row plus the
    zero padding along W folded into a single matmul operand.
    """
    kh_sz, kw_sz, cin, cout = w.shape
    wi = jnp.arange(w_in)[:, None]
    wo = jnp.arange(w_out)[None, :]
    kw = wi - wo + pad_w
    valid = (kw >= 0) & (kw < kw_sz)
    g = w[:, jnp.clip(kw, 0, kw_sz - 1), :, :]             # (KH, w_in, w_out, Cin, Cout)
    g = jnp.where(valid[None, :, :, None, None], g, 0.0)
    g = jnp.transpose(g, (0, 1, 3, 2, 4))                  # (KH, w_in, Cin, w_out, Cout)
    return g.reshape(kh_sz, w_in * cin, w_out * cout)


def prepare_params(params, sz, sp, vip):
    """Re-layout the PyTorch-shaped parameters once:
      * conv weights -> banded (W*Cin, Wo*Cout) bf16 matrices per H tap
        (cnn_1's 5 taps additionally stacked into one (5*sz, Wo*16) matrix),
      * fc1 weight -> (Ho, Wo*16, 64) bf16 with the NCHW flatten folded in,
      * all 7 biases packed into one (8, Wo*16) f32 buffer,
      * vip2/vip_back2/out packed into one (192, 64) bf16 buffer (zero padded).
    """
    # TODO(synk): even sp would change the PyTorch pad/view semantics; only odd
    # sp ('same' VIP convs) is supported.
    assert sp % 2 == 1, "only odd sp is supported"
    assert vip <= 16, "bias/weight packing assumes vip <= 16"
    ho = wo = sz - 4
    pad = (sp - 1) // 2
    bf16 = jnp.bfloat16

    w1 = jnp.transpose(params["cnn1_w"], (2, 3, 1, 0))      # (5, 5, 1, 16)
    w2 = jnp.transpose(params["vip1_w"], (2, 3, 1, 0))      # (sp, sp, 16, vip)
    w3 = jnp.transpose(params["vipb1_w"], (2, 3, 1, 0))     # (sp, sp, vip, 16)

    w1b = _band_weights(w1, sz, wo, 0)                      # (5, sz, wo*16)
    w1s = w1b.reshape(5 * sz, wo * 16).astype(bf16)         # rows = (kh, wi)
    w2b = _band_weights(w2, wo, wo, pad).astype(bf16)       # (sp, wo*16, wo*vip)
    w3b = _band_weights(w3, wo, wo, pad).astype(bf16)       # (sp, wo*vip, wo*16)

    # fc1: rows become (wo, c) per ho block -> consumes the conv layout directly.
    fc1w3 = (params["fc1_w"].reshape(64, 16, ho, wo)
             .transpose(2, 3, 1, 0).reshape(ho, wo * 16, 64).astype(bf16))

    lane = wo * 16

    def row(v):
        return jnp.pad(v, (0, lane - v.shape[0]))[None, :]

    bias_pack = jnp.concatenate([
        row(jnp.tile(params["cnn1_b"], wo)),        # 0: conv1 bias   (wo*16)
        row(jnp.tile(params["vip1_b"], wo)),        # 1: vip1 bias    (wo*vip)
        row(jnp.tile(params["vipb1_b"], wo)),       # 2: vip_back1 bias
        row(params["fc1_b"]),                       # 3: fc1 bias     (64)
        row(params["vip2_b"]),                      # 4: vip2 bias    (vip)
        row(params["vipb2_b"]),                     # 5: vip_back2 bias (64)
        row(params["out_b"]),                       # 6: out bias     (10)
        jnp.zeros((1, lane), jnp.float32),          # 7: pad to 8 rows
    ], axis=0)

    def blk(w):                                     # zero pad to a 64x64 block
        return jnp.pad(w, ((0, 64 - w.shape[0]), (0, 64 - w.shape[1])))

    fcw_pack = jnp.concatenate([
        blk(params["vip2_w"].T),                    # rows   0.. 63: 64 -> vip
        blk(params["vipb2_w"].T),                   # rows  64..127: vip -> 64
        blk(params["out_w"].T),                     # rows 128..191: 64 -> 10
    ], axis=0).astype(bf16)

    return {"w1s": w1s, "w2b": w2b, "w3b": w3b, "fc1w3": fc1w3,
            "bias_pack": bias_pack, "fcw_pack": fcw_pack}


# ----------------------------------------------------------------------------
# Parameters (PyTorch-shaped) and forward pass
# ----------------------------------------------------------------------------
def init_params(key, sz, sp, vip):
    def uni(k, shape, fan_in):
        bound = 1.0 / float(fan_in) ** 0.5
        return jax.random.uniform(k, shape, jnp.float32, -bound, bound)

    keys = jax.random.split(key, 14)
    feat = 16 * (sz - 4) * (sz - 4)
    return {
        "cnn1_w":  uni(keys[0],  (16, 1, 5, 5),        1 * 5 * 5),
        "cnn1_b":  uni(keys[1],  (16,),                1 * 5 * 5),
        "vip1_w":  uni(keys[2],  (vip, 16, sp, sp),    16 * sp * sp),
        "vip1_b":  uni(keys[3],  (vip,),               16 * sp * sp),
        "vipb1_w": uni(keys[4],  (16, vip, sp, sp),    vip * sp * sp),
        "vipb1_b": uni(keys[5],  (16,),                vip * sp * sp),
        "fc1_w":   uni(keys[6],  (64, feat),           feat),
        "fc1_b":   uni(keys[7],  (64,),                feat),
        "vip2_w":  uni(keys[8],  (vip, 64),            64),
        "vip2_b":  uni(keys[9],  (vip,),               64),
        "vipb2_w": uni(keys[10], (64, vip),            vip),
        "vipb2_b": uni(keys[11], (64,),                vip),
        "out_w":   uni(keys[12], (10, 64),             64),
        "out_b":   uni(keys[13], (10,),                64),
    }


def cnn_switch_2l_forward(prep, x_nchw, *, sw, s_pr, sp):
    """x_nchw: (N, 1, sz, sz) float32 -> logits (N, 10).  ONE pallas_call."""
    # TODO(synk): the s_pr != 0 branch of the PyTorch forward multiplies by an
    # undefined `y1`/`y3` (it would raise NameError); only s_pr == 0 is implemented.
    assert s_pr == 0, "s_pr != 0 branch is undefined in the reference module"
    n, _, sz, _ = x_nchw.shape
    h_out = w_out = sz - 4
    pad = (sp - 1) // 2
    use_vip = (sw == 1)

    # Stack the 5 row-shifted windows of the (2 KB) input along lanes so cnn_1
    # is a single wide-K matmul inside the kernel.  Rows are (ho, n)-major so
    # the VIP H taps later become pure global row shifts.
    ximg = x_nchw[:, 0, :, :]
    taps = jnp.stack([ximg[:, kh:kh + h_out, :] for kh in range(5)], axis=2)
    xt = jnp.transpose(taps, (1, 0, 2, 3)).reshape(h_out * n, 5 * sz)
    xt = xt.astype(jnp.bfloat16)

    args = [xt, prep["w1s"], prep["bias_pack"]]
    scratch = []
    if use_vip:
        p0 = ((pad * n + 7) // 8) * 8                # 8-aligned shift padding
        srows = 2 * p0 + n * h_out
        args += [prep["w2b"], prep["w3b"]]
        scratch = [pltpu.VMEM((srows, w_out * 16), jnp.float32),
                   pltpu.VMEM((srows, prep["w2b"].shape[2]), jnp.float32)]
    args += [prep["fc1w3"], prep["fcw_pack"]]

    kernel = functools.partial(_fused_kernel, use_vip=use_vip, n_batch=n,
                               h_out=h_out, w_out=w_out, sp=sp)
    return pl.pallas_call(
        kernel,
        out_shape=jax.ShapeDtypeStruct((n, 10), jnp.float32),
        in_specs=[_VMEM] * len(args),
        out_specs=_VMEM,
        scratch_shapes=scratch,
    )(*args)


# ----------------------------------------------------------------------------
# Pure-JAX reference (direct transliteration of the PyTorch forward, s_pr == 0)
# ----------------------------------------------------------------------------
def _reference_forward(params, x, sw, sp):
    hi = jax.lax.Precision.HIGHEST
    pad = (sp - 1) // 2

    def conv(y, w, b, p):
        out = jax.lax.conv_general_dilated(
            y, w, window_strides=(1, 1), padding=[(p, p), (p, p)],
            dimension_numbers=("NCHW", "OIHW", "NCHW"), precision=hi)
        return out + b.reshape(1, -1, 1, 1)

    out = conv(x, params["cnn1_w"], params["cnn1_b"], 0)
    if sw == 1:
        y1 = jax.nn.relu(conv(out, params["vip1_w"], params["vip1_b"], pad))
        out = out + conv(y1, params["vipb1_w"], params["vipb1_b"], pad)
    out = jax.nn.relu(out)
    out = out.reshape(out.shape[0], -1)
    out = jnp.dot(out, params["fc1_w"].T, precision=hi) + params["fc1_b"]
    if sw == 1:
        y3 = jax.nn.relu(jnp.dot(out, params["vip2_w"].T, precision=hi)
                         + params["vip2_b"])
        out = out + jnp.dot(y3, params["vipb2_w"].T, precision=hi) + params["vipb2_b"]
    out = jax.nn.relu(out)
    return jnp.dot(out, params["out_w"].T, precision=hi) + params["out_b"]


# ----------------------------------------------------------------------------
if __name__ == "__main__":
    sz, sp, vip, batch = 16, 3, 4, 2
    key = jax.random.PRNGKey(0)
    pkey, xkey = jax.random.split(key)

    params = init_params(pkey, sz, sp, vip)
    x = jax.random.normal(xkey, (batch, 1, sz, sz), jnp.float32)

    prep = prepare_params(params, sz, sp, vip)               # one-time re-layout

    fwd1 = jax.jit(functools.partial(cnn_switch_2l_forward, sw=1, s_pr=0, sp=sp))
    fwd0 = jax.jit(functools.partial(cnn_switch_2l_forward, sw=0, s_pr=0, sp=sp))
    out1 = fwd1(prep, x)
    out0 = fwd0(prep, x)
    jax.block_until_ready((out1, out0))
    assert out1.shape == (batch, 10) and out1.dtype == jnp.float32
    assert out0.shape == (batch, 10)

    # Validate both switch paths against the f32 (HIGHEST precision) reference.
    # Tolerance covers the expected ~1e-2 drift of bf16 MXU operands with f32
    # accumulation (the reviewed/intended precision choice).
    ref1 = _reference_forward(params, x, 1, sp)
    ref0 = _reference_forward(params, x, 0, sp)
    err1 = float(jnp.max(jnp.abs(out1 - ref1)))
    err0 = float(jnp.max(jnp.abs(out0 - ref0)))
    assert err1 < 3e-2 and err0 < 3e-2, (err1, err0)

    print("KERNEL_OK")
</pallas_src>

<mosaic_0001>
module attributes {stable_mosaic.version = 11 : i64} {
  func.func @_fused_kernel(%arg0: memref<24x80xbf16, #tpu.memory_space<vmem>>, %arg1: memref<80x192xbf16, #tpu.memory_space<vmem>>, %arg2: memref<8x192xf32, #tpu.memory_space<vmem>>, %arg3: memref<3x192x48xbf16, #tpu.memory_space<vmem>>, %arg4: memref<3x48x192xbf16, #tpu.memory_space<vmem>>, %arg5: memref<12x192x64xbf16, #tpu.memory_space<vmem>>, %arg6: memref<192x64xbf16, #tpu.memory_space<vmem>>, %arg7: memref<2x10xf32, #tpu.memory_space<vmem>>, %arg8: memref<40x192xf32, #tpu.memory_space<vmem>>, %arg9: memref<40x48xf32, #tpu.memory_space<vmem>>) attributes {dimension_semantics = [], scalar_prefetch = 0 : i64, scratch_operands = 2 : i64, tpu.core_type = #tpu.core_type<tc>} {
    %c0 = arith.constant 0 : index
    %c0_0 = arith.constant 0 : index
    %0 = vector.load %arg0[%c0, %c0_0] : memref<24x80xbf16, #tpu.memory_space<vmem>>, vector<24x80xbf16>
    %c0_1 = arith.constant 0 : index
    %c0_2 = arith.constant 0 : index
    %1 = vector.load %arg1[%c0_1, %c0_2] : memref<80x192xbf16, #tpu.memory_space<vmem>>, vector<80x192xbf16>
    %cst = arith.constant dense<0.000000e+00> : vector<24x192xf32>
    %2 = tpu.matmul %0, %1, %cst {dimension_numbers = #tpu.dot_dimension_numbers<[1], [0], [0], [1], [0, 0, 1, 1], [], []>} : vector<24x80xbf16>, vector<80x192xbf16>, vector<24x192xf32> -> vector<24x192xf32>
    %c0_3 = arith.constant 0 : index
    %c0_4 = arith.constant 0 : index
    %3 = vector.load %arg2[%c0_3, %c0_4] : memref<8x192xf32, #tpu.memory_space<vmem>>, vector<1x192xf32>
    %4 = vector.broadcast %3 : vector<1x192xf32> to vector<24x192xf32>
    %5 = arith.addf %2, %4 : vector<24x192xf32>
    %cst_5 = arith.constant 0.000000e+00 : f32
    %6 = vector.broadcast %cst_5 : f32 to vector<40x192xf32>
    %c0_6 = arith.constant 0 : index
    %c0_7 = arith.constant 0 : index
    %7 = vector.load %arg8[%c0_6, %c0_7] : memref<40x192xf32, #tpu.memory_space<vmem>>, vector<40x192xf32>
    tpu.vector_store %arg8[%c0_6, %c0_7], %6 {strides = array<i32>} : memref<40x192xf32, #tpu.memory_space<vmem>>, vector<40x192xf32>,
    %c8 = arith.constant 8 : index
    %c0_8 = arith.constant 0 : index
    %8 = vector.load %arg8[%c8, %c0_8] : memref<40x192xf32, #tpu.memory_space<vmem>>, vector<24x192xf32>
    tpu.vector_store %arg8[%c8, %c0_8], %5 {strides = array<i32>} : memref<40x192xf32, #tpu.memory_space<vmem>>, vector<24x192xf32>,
    %cst_9 = arith.constant 0.000000e+00 : f32
    %9 = vector.broadcast %cst_9 : f32 to vector<24x48xf32>
    %c6 = arith.constant 6 : index
    %c0_10 = arith.constant 0 : index
    %10 = vector.load %arg8[%c6, %c0_10] : memref<40x192xf32, #tpu.memory_space<vmem>>, vector<24x192xf32>
    %11 = arith.truncf %10 : vector<24x192xf32> to vector<24x192xbf16>
    %c0_11 = arith.constant 0 : index
    %c0_12 = arith.constant 0 : index
    %c0_13 = arith.constant 0 : index
    %12 = vector.load %arg3[%c0_11, %c0_12, %c0_13] : memref<3x192x48xbf16, #tpu.memory_space<vmem>>, vector<1x192x48xbf16>
    %13 = vector.shape_cast %12 : vector<1x192x48xbf16> to vector<192x48xbf16>
    %cst_14 = arith.constant dense<0.000000e+00> : vector<24x48xf32>
    %14 = tpu.matmul %11, %13, %cst_14 {dimension_numbers = #tpu.dot_dimension_numbers<[1], [0], [0], [1], [0, 0, 1, 1], [], []>} : vector<24x192xbf16>, vector<192x48xbf16>, vector<24x48xf32> -> vector<24x48xf32>
    %15 = arith.addf %9, %14 : vector<24x48xf32>
    %c8_15 = arith.constant 8 : index
    %c0_16 = arith.constant 0 : index
    %16 = vector.load %arg8[%c8_15, %c0_16] : memref<40x192xf32, #tpu.memory_space<vmem>>, vector<24x192xf32>
    %17 = arith.truncf %16 : vector<24x192xf32> to vector<24x192xbf16>
    %c1 = arith.constant 1 : index
    %c0_17 = arith.constant 0 : index
    %c0_18 = arith.constant 0 : index
    %18 = vector.load %arg3[%c1, %c0_17, %c0_18] : memref<3x192x48xbf16, #tpu.memory_space<vmem>>, vector<1x192x48xbf16>
    %19 = vector.shape_cast %18 : vector<1x192x48xbf16> to vector<192x48xbf16>
    %cst_19 = arith.constant dense<0.000000e+00> : vector<24x48xf32>
    %20 = tpu.matmul %17, %19, %cst_19 {dimension_numbers = #tpu.dot_dimension_numbers<[1], [0], [0], [1], [0, 0, 1, 1], [], []>} : vector<24x192xbf16>, vector<192x48xbf16>, vector<24x48xf32> -> vector<24x48xf32>
    %21 = arith.addf %15, %20 : vector<24x48xf32>
    %c10 = arith.constant 10 : index
    %c0_20 = arith.constant 0 : index
    %22 = vector.load %arg8[%c10, %c0_20] : memref<40x192xf32, #tpu.memory_space<vmem>>, vector<24x192xf32>
    %23 = arith.truncf %22 : vector<24x192xf32> to vector<24x192xbf16>
    %c2 = arith.constant 2 : index
    %c0_21 = arith.constant 0 : index
    %c0_22 = arith.constant 0 : index
    %24 = vector.load %arg3[%c2, %c0_21, %c0_22] : memref<3x192x48xbf16, #tpu.memory_space<vmem>>, vector<1x192x48xbf16>
    %25 = vector.shape_cast %24 : vector<1x192x48xbf16> to vector<192x48xbf16>
    %cst_23 = arith.constant dense<0.000000e+00> : vector<24x48xf32>
    %26 = tpu.matmul %23, %25, %cst_23 {dimension_numbers = #tpu.dot_dimension_numbers<[1], [0], [0], [1], [0, 0, 1, 1], [], []>} : vector<24x192xbf16>, vector<192x48xbf16>, vector<24x48xf32> -> vector<24x48xf32>
    %27 = arith.addf %21, %26 : vector<24x48xf32>
    %c1_24 = arith.constant 1 : index
    %c0_25 = arith.constant 0 : index
    %28 = vector.load %arg2[%c1_24, %c0_25] : memref<8x192xf32, #tpu.memory_space<vmem>>, vector<1x48xf32>
    %29 = vector.broadcast %28 : vector<1x48xf32> to vector<24x48xf32>
    %30 = arith.addf %27, %29 : vector<24x48xf32>
    %cst_26 = arith.constant 0.000000e+00 : f32
    %31 = vector.broadcast %cst_26 : f32 to vector<24x48xf32>
    %32 = arith.maximumf %30, %31 : vector<24x48xf32>
    %cst_27 = arith.constant 0.000000e+00 : f32
    %33 = vector.broadcast %cst_27 : f32 to vector<40x48xf32>
    %c0_28 = arith.constant 0 : index
    %c0_29 = arith.constant 0 : index
    %34 = vector.load %arg9[%c0_28, %c0_29] : memref<40x48xf32, #tpu.memory_space<vmem>>, vector<40x48xf32>
    tpu.vector_store %arg9[%c0_28, %c0_29], %33 {strides = array<i32>} : memref<40x48xf32, #tpu.memory_space<vmem>>, vector<40x48xf32>,
    %c8_30 = arith.constant 8 : index
    %c0_31 = arith.constant 0 : index
    %35 = vector.load %arg9[%c8_30, %c0_31] : memref<40x48xf32, #tpu.memory_space<vmem>>, vector<24x48xf32>
    tpu.vector_store %arg9[%c8_30, %c0_31], %32 {strides = array<i32>} : memref<40x48xf32, #tpu.memory_space<vmem>>, vector<24x48xf32>,
    %cst_32 = arith.constant 0.000000e+00 : f32
    %36 = vector.broadcast %cst_32 : f32 to vector<24x192xf32>
    %c6_33 = arith.constant 6 : index
    %c0_34 = arith.constant 0 : index
    %37 = vector.load %arg9[%c6_33, %c0_34] : memref<40x48xf32, #tpu.memory_space<vmem>>, vector<24x48xf32>
    %38 = arith.truncf %37 : vector<24x48xf32> to vector<24x48xbf16>
    %c0_35 = arith.constant 0 : index
    %c0_36 = arith.constant 0 : index
    %c0_37 = arith.constant 0 : index
    %39 = vector.load %arg4[%c0_35, %c0_36, %c0_37] : memref<3x48x192xbf16, #tpu.memory_space<vmem>>, vector<1x48x192xbf16>
    %40 = vector.shape_cast %39 : vector<1x48x192xbf16> to vector<48x192xbf16>
    %cst_38 = arith.constant dense<0.000000e+00> : vector<24x192xf32>
    %41 = tpu.matmul %38, %40, %cst_38 {dimension_numbers = #tpu.dot_dimension_numbers<[1], [0], [0], [1], [0, 0, 1, 1], [], []>} : vector<24x48xbf16>, vector<48x192xbf16>, vector<24x192xf32> -> vector<24x192xf32>
    %42 = arith.addf %36, %41 : vector<24x192xf32>
    %c8_39 = arith.constant 8 : index
    %c0_40 = arith.constant 0 : index
    %43 = vector.load %arg9[%c8_39, %c0_40] : memref<40x48xf32, #tpu.memory_space<vmem>>, vector<24x48xf32>
    %44 = arith.truncf %43 : vector<24x48xf32> to vector<24x48xbf16>
    %c1_41 = arith.constant 1 : index
    %c0_42 = arith.constant 0 : index
    %c0_43 = arith.constant 0 : index
    %45 = vector.load %arg4[%c1_41, %c0_42, %c0_43] : memref<3x48x192xbf16, #tpu.memory_space<vmem>>, vector<1x48x192xbf16>
    %46 = vector.shape_cast %45 : vector<1x48x192xbf16> to vector<48x192xbf16>
    %cst_44 = arith.constant dense<0.000000e+00> : vector<24x192xf32>
    %47 = tpu.matmul %44, %46, %cst_44 {dimension_numbers = #tpu.dot_dimension_numbers<[1], [0], [0], [1], [0, 0, 1, 1], [], []>} : vector<24x48xbf16>, vector<48x192xbf16>, vector<24x192xf32> -> vector<24x192xf32>
    %48 = arith.addf %42, %47 : vector<24x192xf32>
    %c10_45 = arith.constant 10 : index
    %c0_46 = arith.constant 0 : index
    %49 = vector.load %arg9[%c10_45, %c0_46] : memref<40x48xf32, #tpu.memory_space<vmem>>, vector<24x48xf32>
    %50 = arith.truncf %49 : vector<24x48xf32> to vector<24x48xbf16>
    %c2_47 = arith.constant 2 : index
    %c0_48 = arith.constant 0 : index
    %c0_49 = arith.constant 0 : index
    %51 = vector.load %arg4[%c2_47, %c0_48, %c0_49] : memref<3x48x192xbf16, #tpu.memory_space<vmem>>, vector<1x48x192xbf16>
    %52 = vector.shape_cast %51 : vector<1x48x192xbf16> to vector<48x192xbf16>
    %cst_50 = arith.constant dense<0.000000e+00> : vector<24x192xf32>
    %53 = tpu.matmul %50, %52, %cst_50 {dimension_numbers = #tpu.dot_dimension_numbers<[1], [0], [0], [1], [0, 0, 1, 1], [], []>} : vector<24x48xbf16>, vector<48x192xbf16>, vector<24x192xf32> -> vector<24x192xf32>
    %54 = arith.addf %48, %53 : vector<24x192xf32>
    %55 = arith.addf %5, %54 : vector<24x192xf32>
    %c2_51 = arith.constant 2 : index
    %c0_52 = arith.constant 0 : index
    %56 = vector.load %arg2[%c2_51, %c0_52] : memref<8x192xf32, #tpu.memory_space<vmem>>, vector<1x192xf32>
    %57 = vector.broadcast %56 : vector<1x192xf32> to vector<24x192xf32>
    %58 = arith.addf %55, %57 : vector<24x192xf32>
    %cst_53 = arith.constant 0.000000e+00 : f32
    %59 = vector.broadcast %cst_53 : f32 to vector<24x192xf32>
    %60 = arith.maximumf %58, %59 : vector<24x192xf32>
    %cst_54 = arith.constant 0.000000e+00 : f32
    %61 = vector.broadcast %cst_54 : f32 to vector<2x64xf32>
    %62 = vector.extract_strided_slice %60 {offsets = [0, 0], sizes = [2, 192], strides = [1, 1]} : vector<24x192xf32> to vector<2x192xf32>
    %63 = arith.truncf %62 : vector<2x192xf32> to vector<2x192xbf16>
    %c0_55 = arith.constant 0 : index
    %c0_56 = arith.constant 0 : index
    %c0_57 = arith.constant 0 : index
    %64 = vector.load %arg5[%c0_55, %c0_56, %c0_57] : memref<12x192x64xbf16, #tpu.memory_space<vmem>>, vector<1x192x64xbf16>
    %65 = vector.shape_cast %64 : vector<1x192x64xbf16> to vector<192x64xbf16>
    %cst_58 = arith.constant dense<0.000000e+00> : vector<2x64xf32>
    %66 = tpu.matmul %63, %65, %cst_58 {dimension_numbers = #tpu.dot_dimension_numbers<[1], [0], [0], [1], [0, 0, 1, 1], [], []>} : vector<2x192xbf16>, vector<192x64xbf16>, vector<2x64xf32> -> vector<2x64xf32>
    %67 = arith.addf %61, %66 : vector<2x64xf32>
    %68 = vector.extract_strided_slice %60 {offsets = [2, 0], sizes = [2, 192], strides = [1, 1]} : vector<24x192xf32> to vector<2x192xf32>
    %69 = arith.truncf %68 : vector<2x192xf32> to vector<2x192xbf16>
    %c1_59 = arith.constant 1 : index
    %c0_60 = arith.constant 0 : index
    %c0_61 = arith.constant 0 : index
    %70 = vector.load %arg5[%c1_59, %c0_60, %c0_61] : memref<12x192x64xbf16, #tpu.memory_space<vmem>>, vector<1x192x64xbf16>
    %71 = vector.shape_cast %70 : vector<1x192x64xbf16> to vector<192x64xbf16>
    %cst_62 = arith.constant dense<0.000000e+00> : vector<2x64xf32>
    %72 = tpu.matmul %69, %71, %cst_62 {dimension_numbers = #tpu.dot_dimension_numbers<[1], [0], [0], [1], [0, 0, 1, 1], [], []>} : vector<2x192xbf16>, vector<192x64xbf16>, vector<2x64xf32> -> vector<2x64xf32>
    %73 = arith.addf %67, %72 : vector<2x64xf32>
    %74 = vector.extract_strided_slice %60 {offsets = [4, 0], sizes = [2, 192], strides = [1, 1]} : vector<24x192xf32> to vector<2x192xf32>
    %75 = arith.truncf %74 : vector<2x192xf32> to vector<2x192xbf16>
    %c2_63 = arith.constant 2 : index
    %c0_64 = arith.constant 0 : index
    %c0_65 = arith.constant 0 : index
    %76 = vector.load %arg5[%c2_63, %c0_64, %c0_65] : memref<12x192x64xbf16, #tpu.memory_space<vmem>>, vector<1x192x64xbf16>
    %77 = vector.shape_cast %76 : vector<1x192x64xbf16> to vector<192x64xbf16>
    %cst_66 = arith.constant dense<0.000000e+00> : vector<2x64xf32>
    %78 = tpu.matmul %75, %77, %cst_66 {dimension_numbers = #tpu.dot_dimension_numbers<[1], [0], [0], [1], [0, 0, 1, 1], [], []>} : vector<2x192xbf16>, vector<192x64xbf16>, vector<2x64xf32> -> vector<2x64xf32>
    %79 = arith.addf %73, %78 : vector<2x64xf32>
    %80 = vector.extract_strided_slice %60 {offsets = [6, 0], sizes = [2, 192], strides = [1, 1]} : vector<24x192xf32> to vector<2x192xf32>
    %81 = arith.truncf %80 : vector<2x192xf32> to vector<2x192xbf16>
    %c3 = arith.constant 3 : index
    %c0_67 = arith.constant 0 : index
    %c0_68 = arith.constant 0 : index
    %82 = vector.load %arg5[%c3, %c0_67, %c0_68] : memref<12x192x64xbf16, #tpu.memory_space<vmem>>, vector<1x192x64xbf16>
    %83 = vector.shape_cast %82 : vector<1x192x64xbf16> to vector<192x64xbf16>
    %cst_69 = arith.constant dense<0.000000e+00> : vector<2x64xf32>
    %84 = tpu.matmul %81, %83, %cst_69 {dimension_numbers = #tpu.dot_dimension_numbers<[1], [0], [0], [1], [0, 0, 1, 1], [], []>} : vector<2x192xbf16>, vector<192x64xbf16>, vector<2x64xf32> -> vector<2x64xf32>
    %85 = arith.addf %79, %84 : vector<2x64xf32>
    %86 = vector.extract_strided_slice %60 {offsets = [8, 0], sizes = [2, 192], strides = [1, 1]} : vector<24x192xf32> to vector<2x192xf32>
    %87 = arith.truncf %86 : vector<2x192xf32> to vector<2x192xbf16>
    %c4 = arith.constant 4 : index
    %c0_70 = arith.constant 0 : index
    %c0_71 = arith.constant 0 : index
    %88 = vector.load %arg5[%c4, %c0_70, %c0_71] : memref<12x192x64xbf16, #tpu.memory_space<vmem>>, vector<1x192x64xbf16>
    %89 = vector.shape_cast %88 : vector<1x192x64xbf16> to vector<192x64xbf16>
    %cst_72 = arith.constant dense<0.000000e+00> : vector<2x64xf32>
    %90 = tpu.matmul %87, %89, %cst_72 {dimension_numbers = #tpu.dot_dimension_numbers<[1], [0], [0], [1], [0, 0, 1, 1], [], []>} : vector<2x192xbf16>, vector<192x64xbf16>, vector<2x64xf32> -> vector<2x64xf32>
    %91 = arith.addf %85, %90 : vector<2x64xf32>
    %92 = vector.extract_strided_slice %60 {offsets = [10, 0], sizes = [2, 192], strides = [1, 1]} : vector<24x192xf32> to vector<2x192xf32>
    %93 = arith.truncf %92 : vector<2x192xf32> to vector<2x192xbf16>
    %c5 = arith.constant 5 : index
    %c0_73 = arith.constant 0 : index
    %c0_74 = arith.constant 0 : index
    %94 = vector.load %arg5[%c5, %c0_73, %c0_74] : memref<12x192x64xbf16, #tpu.memory_space<vmem>>, vector<1x192x64xbf16>
    %95 = vector.shape_cast %94 : vector<1x192x64xbf16> to vector<192x64xbf16>
    %cst_75 = arith.constant dense<0.000000e+00> : vector<2x64xf32>
    %96 = tpu.matmul %93, %95, %cst_75 {dimension_numbers = #tpu.dot_dimension_numbers<[1], [0], [0], [1], [0, 0, 1, 1], [], []>} : vector<2x192xbf16>, vector<192x64xbf16>, vector<2x64xf32> -> vector<2x64xf32>
    %97 = arith.addf %91, %96 : vector<2x64xf32>
    %98 = vector.extract_strided_slice %60 {offsets = [12, 0], sizes = [2, 192], strides = [1, 1]} : vector<24x192xf32> to vector<2x192xf32>
    %99 = arith.truncf %98 : vector<2x192xf32> to vector<2x192xbf16>
    %c6_76 = arith.constant 6 : index
    %c0_77 = arith.constant 0 : index
    %c0_78 = arith.constant 0 : index
    %100 = vector.load %arg5[%c6_76, %c0_77, %c0_78] : memref<12x192x64xbf16, #tpu.memory_space<vmem>>, vector<1x192x64xbf16>
    %101 = vector.shape_cast %100 : vector<1x192x64xbf16> to vector<192x64xbf16>
    %cst_79 = arith.constant dense<0.000000e+00> : vector<2x64xf32>
    %102 = tpu.matmul %99, %101, %cst_79 {dimension_numbers = #tpu.dot_dimension_numbers<[1], [0], [0], [1], [0, 0, 1, 1], [], []>} : vector<2x192xbf16>, vector<192x64xbf16>, vector<2x64xf32> -> vector<2x64xf32>
    %103 = arith.addf %97, %102 : vector<2x64xf32>
    %104 = vector.extract_strided_slice %60 {offsets = [14, 0], sizes = [2, 192], strides = [1, 1]} : vector<24x192xf32> to vector<2x192xf32>
    %105 = arith.truncf %104 : vector<2x192xf32> to vector<2x192xbf16>
    %c7 = arith.constant 7 : index
    %c0_80 = arith.constant 0 : index
    %c0_81 = arith.constant 0 : index
    %106 = vector.load %arg5[%c7, %c0_80, %c0_81] : memref<12x192x64xbf16, #tpu.memory_space<vmem>>, vector<1x192x64xbf16>
    %107 = vector.shape_cast %106 : vector<1x192x64xbf16> to vector<192x64xbf16>
    %cst_82 = arith.constant dense<0.000000e+00> : vector<2x64xf32>
    %108 = tpu.matmul %105, %107, %cst_82 {dimension_numbers = #tpu.dot_dimension_numbers<[1], [0], [0], [1], [0, 0, 1, 1], [], []>} : vector<2x192xbf16>, vector<192x64xbf16>, vector<2x64xf32> -> vector<2x64xf32>
    %109 = arith.addf %103, %108 : vector<2x64xf32>
    %110 = vector.extract_strided_slice %60 {offsets = [16, 0], sizes = [2, 192], strides = [1, 1]} : vector<24x192xf32> to vector<2x192xf32>
    %111 = arith.truncf %110 : vector<2x192xf32> to vector<2x192xbf16>
    %c8_83 = arith.constant 8 : index
    %c0_84 = arith.constant 0 : index
    %c0_85 = arith.constant 0 : index
    %112 = vector.load %arg5[%c8_83, %c0_84, %c0_85] : memref<12x192x64xbf16, #tpu.memory_space<vmem>>, vector<1x192x64xbf16>
    %113 = vector.shape_cast %112 : vector<1x192x64xbf16> to vector<192x64xbf16>
    %cst_86 = arith.constant dense<0.000000e+00> : vector<2x64xf32>
    %114 = tpu.matmul %111, %113, %cst_86 {dimension_numbers = #tpu.dot_dimension_numbers<[1], [0], [0], [1], [0, 0, 1, 1], [], []>} : vector<2x192xbf16>, vector<192x64xbf16>, vector<2x64xf32> -> vector<2x64xf32>
    %115 = arith.addf %109, %114 : vector<2x64xf32>
    %116 = vector.extract_strided_slice %60 {offsets = [18, 0], sizes = [2, 192], strides = [1, 1]} : vector<24x192xf32> to vector<2x192xf32>
    %117 = arith.truncf %116 : vector<2x192xf32> to vector<2x192xbf16>
    %c9 = arith.constant 9 : index
    %c0_87 = arith.constant 0 : index
    %c0_88 = arith.constant 0 : index
    %118 = vector.load %arg5[%c9, %c0_87, %c0_88] : memref<12x192x64xbf16, #tpu.memory_space<vmem>>, vector<1x192x64xbf16>
    %119 = vector.shape_cast %118 : vector<1x192x64xbf16> to vector<192x64xbf16>
    %cst_89 = arith.constant dense<0.000000e+00> : vector<2x64xf32>
    %120 = tpu.matmul %117, %119, %cst_89 {dimension_numbers = #tpu.dot_dimension_numbers<[1], [0], [0], [1], [0, 0, 1, 1], [], []>} : vector<2x192xbf16>, vector<192x64xbf16>, vector<2x64xf32> -> vector<2x64xf32>
    %121 = arith.addf %115, %120 : vector<2x64xf32>
    %122 = vector.extract_strided_slice %60 {offsets = [20, 0], sizes = [2, 192], strides = [1, 1]} : vector<24x192xf32> to vector<2x192xf32>
    %123 = arith.truncf %122 : vector<2x192xf32> to vector<2x192xbf16>
    %c10_90 = arith.constant 10 : index
    %c0_91 = arith.constant 0 : index
    %c0_92 = arith.constant 0 : index
    %124 = vector.load %arg5[%c10_90, %c0_91, %c0_92] : memref<12x192x64xbf16, #tpu.memory_space<vmem>>, vector<1x192x64xbf16>
    %125 = vector.shape_cast %124 : vector<1x192x64xbf16> to vector<192x64xbf16>
    %cst_93 = arith.constant dense<0.000000e+00> : vector<2x64xf32>
    %126 = tpu.matmul %123, %125, %cst_93 {dimension_numbers = #tpu.dot_dimension_numbers<[1], [0], [0], [1], [0, 0, 1, 1], [], []>} : vector<2x192xbf16>, vector<192x64xbf16>, vector<2x64xf32> -> vector<2x64xf32>
    %127 = arith.addf %121, %126 : vector<2x64xf32>
    %128 = vector.extract_strided_slice %60 {offsets = [22, 0], sizes = [2, 192], strides = [1, 1]} : vector<24x192xf32> to vector<2x192xf32>
    %129 = arith.truncf %128 : vector<2x192xf32> to vector<2x192xbf16>
    %c11 = arith.constant 11 : index
    %c0_94 = arith.constant 0 : index
    %c0_95 = arith.constant 0 : index
    %130 = vector.load %arg5[%c11, %c0_94, %c0_95] : memref<12x192x64xbf16, #tpu.memory_space<vmem>>, vector<1x192x64xbf16>
    %131 = vector.shape_cast %130 : vector<1x192x64xbf16> to vector<192x64xbf16>
    %cst_96 = arith.constant dense<0.000000e+00> : vector<2x64xf32>
    %132 = tpu.matmul %129, %131, %cst_96 {dimension_numbers = #tpu.dot_dimension_numbers<[1], [0], [0], [1], [0, 0, 1, 1], [], []>} : vector<2x192xbf16>, vector<192x64xbf16>, vector<2x64xf32> -> vector<2x64xf32>
    %133 = arith.addf %127, %132 : vector<2x64xf32>
    %c3_97 = arith.constant 3 : index
    %c0_98 = arith.constant 0 : index
    %134 = vector.load %arg2[%c3_97, %c0_98] : memref<8x192xf32, #tpu.memory_space<vmem>>, vector<1x64xf32>
    %135 = vector.broadcast %134 : vector<1x64xf32> to vector<2x64xf32>
    %136 = arith.addf %133, %135 : vector<2x64xf32>
    %137 = arith.truncf %136 : vector<2x64xf32> to vector<2x64xbf16>
    %c0_99 = arith.constant 0 : index
    %c0_100 = arith.constant 0 : index
    %138 = vector.load %arg6[%c0_99, %c0_100] : memref<192x64xbf16, #tpu.memory_space<vmem>>, vector<64x64xbf16>
    %cst_101 = arith.constant dense<0.000000e+00> : vector<2x64xf32>
    %139 = tpu.matmul %137, %138, %cst_101 {dimension_numbers = #tpu.dot_dimension_numbers<[1], [0], [0], [1], [0, 0, 1, 1], [], []>} : vector<2x64xbf16>, vector<64x64xbf16>, vector<2x64xf32> -> vector<2x64xf32>
    %c4_102 = arith.constant 4 : index
    %c0_103 = arith.constant 0 : index
    %140 = vector.load %arg2[%c4_102, %c0_103] : memref<8x192xf32, #tpu.memory_space<vmem>>, vector<1x64xf32>
    %141 = vector.broadcast %140 : vector<1x64xf32> to vector<2x64xf32>
    %142 = arith.addf %139, %141 : vector<2x64xf32>
    %cst_104 = arith.constant 0.000000e+00 : f32
    %143 = vector.broadcast %cst_104 : f32 to vector<2x64xf32>
    %144 = arith.maximumf %142, %143 : vector<2x64xf32>
    %145 = arith.truncf %144 : vector<2x64xf32> to vector<2x64xbf16>
    %c64 = arith.constant 64 : index
    %c0_105 = arith.constant 0 : index
    %146 = vector.load %arg6[%c64, %c0_105] : memref<192x64xbf16, #tpu.memory_space<vmem>>, vector<64x64xbf16>
    %cst_106 = arith.constant dense<0.000000e+00> : vector<2x64xf32>
    %147 = tpu.matmul %145, %146, %cst_106 {dimension_numbers = #tpu.dot_dimension_numbers<[1], [0], [0], [1], [0, 0, 1, 1], [], []>} : vector<2x64xbf16>, vector<64x64xbf16>, vector<2x64xf32> -> vector<2x64xf32>
    %148 = arith.addf %136, %147 : vector<2x64xf32>
    %c5_107 = arith.constant 5 : index
    %c0_108 = arith.constant 0 : index
    %149 = vector.load %arg2[%c5_107, %c0_108] : memref<8x192xf32, #tpu.memory_space<vmem>>, vector<1x64xf32>
    %150 = vector.broadcast %149 : vector<1x64xf32> to vector<2x64xf32>
    %151 = arith.addf %148, %150 : vector<2x64xf32>
    %cst_109 = arith.constant 0.000000e+00 : f32
    %152 = vector.broadcast %cst_109 : f32 to vector<2x64xf32>
    %153 = arith.maximumf %151, %152 : vector<2x64xf32>
    %154 = arith.truncf %153 : vector<2x64xf32> to vector<2x64xbf16>
    %c128 = arith.constant 128 : index
    %c0_110 = arith.constant 0 : index
    %155 = vector.load %arg6[%c128, %c0_110] : memref<192x64xbf16, #tpu.memory_space<vmem>>, vector<64x64xbf16>
    %cst_111 = arith.constant dense<0.000000e+00> : vector<2x64xf32>
    %156 = tpu.matmul %154, %155, %cst_111 {dimension_numbers = #tpu.dot_dimension_numbers<[1], [0], [0], [1], [0, 0, 1, 1], [], []>} : vector<2x64xbf16>, vector<64x64xbf16>, vector<2x64xf32> -> vector<2x64xf32>
    %c6_112 = arith.constant 6 : index
    %c0_113 = arith.constant 0 : index
    %157 = vector.load %arg2[%c6_112, %c0_113] : memref<8x192xf32, #tpu.memory_space<vmem>>, vector<1x64xf32>
    %158 = vector.broadcast %157 : vector<1x64xf32> to vector<2x64xf32>
    %159 = arith.addf %156, %158 : vector<2x64xf32>
    %160 = vector.extract_strided_slice %159 {offsets = [0, 0], sizes = [2, 10], strides = [1, 1]} : vector<2x64xf32> to vector<2x10xf32>
    %c0_114 = arith.constant 0 : index
    %c0_115 = arith.constant 0 : index
    %161 = vector.load %arg7[%c0_114, %c0_115] : memref<2x10xf32, #tpu.memory_space<vmem>>, vector<2x10xf32>
    tpu.vector_store %arg7[%c0_114, %c0_115], %160 {strides = array<i32>} : memref<2x10xf32, #tpu.memory_space<vmem>>, vector<2x10xf32>,
    return
  }
}

</mosaic_0001>

<bundles_post_ra>
// kernel: cnn_switch_2l_forward.1
= control target key start
LH: loop header
LB: loop body
LE: loop exit
PB: predicated region body
PF: predicated region fallthrough
CT: control target
= control target key end

     0   :  { %s5177_s0 = inlined_call_operand.vmem [shape: bf16[24,80], index: 0, kind: input, shape index: {}]   ;;  %s5178_s1 = inlined_call_operand.vmem [shape: bf16[80,192], index: 1, kind: input, shape index: {}]   ;;  %s5179_s2 = inlined_call_operand.vmem [shape: f32[8,192], index: 2, kind: input, shape index: {}]   ;;  %s5180_s3 = inlined_call_operand.vmem [shape: bf16[3,192,48], index: 3, kind: input, shape index: {}]   ;;  %s5181_s4 = inlined_call_operand.vmem [shape: bf16[3,48,192], index: 4, kind: input, shape index: {}]   ;;  %s5182_s5 = inlined_call_operand.vmem [shape: bf16[12,192,64], index: 5, kind: input, shape index: {}]   ;;  %s5183_s6 = inlined_call_operand.vmem [shape: bf16[192,64], index: 6, kind: input, shape index: {}]   ;;  %s5184_s7 = inlined_call_operand.hbm [shape: f32[2,10], index: 7, kind: output, shape index: {}]  }
   0x1   :  { %v2710_v0 = vld [vmem:[%s5178_s1 + $0x40] sm:$0xf]  ;;  %v3928_v1 = vld [vmem:[%s5178_s1 + $0x44] sm:$0xf0]  ;;  %v3927_v2 = vld [vmem:[%s5178_s1 + $0x44] sm:$0xf] }
   0x2   :  { %v2711_v3 = vor.u32 %v3928_v1, %v2710_v0  ;;  %v2712_v4 = vld [vmem:[%s5178_s1 + $0x48] sm:$0xf0]  ;;  %v2702_v5 = vld [vmem:[%s5178_s1 + $0x30] sm:$0xf]  ;;  %v3926_v6 = vld [vmem:[%s5178_s1 + $0x34] sm:$0xf0] }
   0x3   :  { %v2715_v7 = vor.u32 %v3927_v2, %v2712_v4  ;;  %v3925_v8 = vld [vmem:[%s5178_s1 + $0x34] sm:$0xf]  ;;  %v2704_v9 = vld [vmem:[%s5178_s1 + $0x38] sm:$0xf0]  ;;  %v2703_v10 = vor.u32 %v3926_v6, %v2702_v5  ;;  %v2694_v12 = vld [vmem:[%s5178_s1 + $0x20] sm:$0xf] }
   0x4   :  { %115 = vmatpush.bf16.msra.mxu0 %v2711_v3  ;;  %v2707_v11 = vor.u32 %v3925_v8, %v2704_v9  ;;  %v3924_v13 = vld [vmem:[%s5178_s1 + $0x24] sm:$0xf0]  ;;  %v3923_v14 = vld [vmem:[%s5178_s1 + $0x24] sm:$0xf]  ;;  %v2696_v15 = vld [vmem:[%s5178_s1 + $0x28] sm:$0xf0] }
   0x5   :  { %133 = vmatpush.bf16.msra.mxu1 %v2715_v7  ;;  %v2695_v16 = vor.u32 %v3924_v13, %v2694_v12  ;;  %v3948_v17 = vld [vmem:[%s5180_s3 + $0x98] sm:$0xff]  ;;  %v2699_v18 = vor.u32 %v3923_v14, %v2696_v15  ;;  %v2686_v19 = vld [vmem:[%s5178_s1 + $0x10] sm:$0xf] }
   0x6   :  { %v3922_v20 = vld [vmem:[%s5178_s1 + $0x14] sm:$0xf0] }
   0x8   :  { %116 = vmatpush.bf16.msra.mxu0 %v2703_v10 }
   0x9   :  { %134 = vmatpush.bf16.msra.mxu1 %v2707_v11 }
   0xa   :  { %12 = vsyncpa [#allocation5], 0  ;;  %v3921_v21 = vld [vmem:[%s5178_s1 + $0x14] sm:$0xf]  ;;  %v2688_v22 = vld [vmem:[%s5178_s1 + $0x18] sm:$0xf0]  ;;  %310 = vmatpush.bf16.msra.mxu2 %v3948_v17  ;;  %v2687_v24 = vor.u32 %v3922_v20, %v2686_v19 }
   0xb   :  { %v3947_v23 = vld [vmem:[%s5180_s3 + $0x90] sm:$0xff]  ;;  %v2691_v25 = vor.u32 %v3921_v21, %v2688_v22  ;;  %v2678_v26 = vld [vmem:[%s5178_s1] sm:$0xf]  ;;  %v3920_v27 = vld [vmem:[%s5178_s1 + $0x4] sm:$0xf0]  ;;  %vm105_vm0 = vcmask 654336  }
   0xc   :  { %117 = vmatpush.bf16.msra.mxu0 %v2695_v16  ;;  %v3919_v28 = vld [vmem:[%s5178_s1 + $0x4] sm:$0xf]  ;;  %v2680_v29 = vld [vmem:[%s5178_s1 + $0x8] sm:$0xf0]  ;;  %v2679_v31 = vor.u32 %v3920_v27, %v2678_v26  ;;  %v30_v34 = vld [vmem:[%s5177_s0 + $0x8] sm:$0xf] }
   0xd   :  { %135 = vmatpush.bf16.msra.mxu1 %v2699_v18  ;;  %v3946_v30 = vld [vmem:[%s5180_s3 + $0x88] sm:$0xff]  ;;  %v2683_v32 = vor.u32 %v3919_v28, %v2680_v29  ;;  %v3918_v33 = vld [vmem:[%s5177_s0] sm:$0xff]  ;;  %v52_v35 = vunpack.c.l.b16 %v30_v34  ;;  %v3960_v37 = vld [vmem:[%s5180_s3 + $0xf8] sm:$0xff]  ;;  %v4167_v43 = vmov 0.0   ;;  %vm149_vm1 = vcmask 523264   ;;  %s4168_s13 = smov [#allocation4]  }
   0xe   :  { %311 = vmatpush.bf16.msra.mxu2 %v3947_v23  ;;  %v3945_v38 = vld [vmem:[%s5180_s3 + $0x80] sm:$0xff]  ;;  %v3959_v39 = vld [vmem:[%s5180_s3 + $0xf0] sm:$0xff]  ;;  %v3944_v40 = vld [vmem:[%s5180_s3 + $0x78] sm:$0xff]  ;;  %148 = vst [vmem:[#allocation2] sm:$0xff] %v4167_v43  ;;  %vm514_vm2 = vcmask 1046528   ;;  %vm350_vm3 = vcmask 1044480  }
   0xf   :  { %v54_v36 = vpack.c.b16 %v52_v35, %v52_v35  ;;  %v3958_v41 = vld [vmem:[%s5180_s3 + $0xe8] sm:$0xff]  ;;  %v3943_v42 = vld [vmem:[%s5180_s3 + $0x70] sm:$0xff]  ;;  %157 = vst [vmem:[#allocation2 + $0x40] sm:$0xff] %v4167_v43  ;;  %v3952_v44 = vld [vmem:[%s5180_s3 + $0xb8] sm:$0xff]  ;;  %vm647_vm4 = vcmask 392192   ;;  %s2661_s14 = sshll.u32 %s4168_s13, 4  ;;  %s2662_s14 = int_to_ptr.vmem [resolvable:$true] %s2661_s14 }
  0x10   :  { %118 = vmatpush.bf16.msra.mxu0 %v2687_v24  ;;  %152 = vst.msk [vmem:[#allocation2 + $0x18] sm:$0xff] %vm149_vm1, %v4167_v43  ;;  %v3957_v45 = vld [vmem:[%s5180_s3 + $0xe0] sm:$0xff]  ;;  %v3942_v46 = vld [vmem:[%s5180_s3 + $0x68] sm:$0xff]  ;;  %332 = vmatpush.bf16.msra.mxu3 %v3952_v44  ;;  %v3956_v47 = vld [vmem:[%s5180_s3 + $0xd8] sm:$0xff]  ;;  %s2663_s16 = sshll.u32 %s5184_s7, 4  ;;  %vm2654_vm5 = vcmask 74752   ;;  %s2664_s16 = int_to_ptr.hbm [resolvable:$true] %s2663_s16 }
  0x11   :  { %136 = vmatpush.bf16.msra.mxu1 %v2691_v25  ;;  %150 = vst.msk [vmem:[#allocation2 + $0x8] sm:$0xff] %vm149_vm1, %v4167_v43  ;;  %v3951_v48 = vld [vmem:[%s5180_s3 + $0xb0] sm:$0xff]  ;;  %v3941_v49 = vld [vmem:[%s5180_s3 + $0x60] sm:$0xff]  ;;  %v3950_v50 = vld [vmem:[%s5180_s3 + $0xa8] sm:$0xff] }
  0x12   :  { %312 = vmatpush.bf16.msra.mxu2 %v3946_v30  ;;  %154 = vst.msk [vmem:[#allocation2 + $0x28] sm:$0xff] %vm149_vm1, %v4167_v43  ;;  %v3955_v51 = vld [vmem:[%s5180_s3 + $0xd0] sm:$0xff]  ;;  %v3940_v52 = vld [vmem:[%s5180_s3 + $0x58] sm:$0xff]  ;;  %v3954_v53 = vld [vmem:[%s5180_s3 + $0xc8] sm:$0xff] }
  0x13   :  { %156 = vst.msk [vmem:[#allocation2 + $0x38] sm:$0xff] %vm149_vm1, %v4167_v43  ;;  %v3949_v54 = vld [vmem:[%s5180_s3 + $0xa0] sm:$0xff]  ;;  %v3939_v55 = vld [vmem:[%s5180_s3 + $0x50] sm:$0xff]  ;;  %v3936_v57 = vld [vmem:[%s5180_s3 + $0x38] sm:$0xff] }
  0x14   :  { %119 = vmatpush.bf16.msra.mxu0 %v2679_v31  ;;  %158 = vst.msk [vmem:[#allocation2 + $0x48] sm:$0xff] %vm149_vm1, %v4167_v43  ;;  %333 = vmatpush.bf16.msra.mxu3 %v3951_v48  ;;  %v3953_v56 = vld [vmem:[%s5180_s3 + $0xc0] sm:$0xff]  ;;  %v3938_v58 = vld [vmem:[%s5180_s3 + $0x48] sm:$0xff]  ;;  %v3935_v59 = vld [vmem:[%s5180_s3 + $0x30] sm:$0xff] }
  0x15   :  { %137 = vmatpush.bf16.msra.mxu1 %v2683_v32  ;;  %v41_v60 = vld [vmem:[%s5179_s2] ss:$8 sm:$0x3]  ;;  %v3964_v0 = vld [vmem:[%s5180_s3 + $0x118] sm:$0xff]  ;;  %v3963_v6 = vld [vmem:[%s5180_s3 + $0x110] sm:$0xff]  ;;  %649 = vst.msk [vmem:[#allocation3 + $0x8] sm:$0xff] %vm647_vm4, %v4167_v43 }
  0x16   :  { %313 = vmatpush.bf16.msra.mxu2 %v3945_v38  ;;  %v3937_v61 = vld [vmem:[%s5180_s3 + $0x40] sm:$0xff]  ;;  %v43_v62 = vperm.slane %v41_v60, 0  ;;  %v3934_v63 = vld [vmem:[%s5180_s3 + $0x28] sm:$0xff]  ;;  %v44_v1 = vperm.slane %v41_v60, 1  ;;  %v3932_v8 = vld [vmem:[%s5180_s3 + $0x18] sm:$0xff]  ;;  %648 = vst.msk [vmem:[#allocation3] sm:$0xff] %vm647_vm4, %v4167_v43 }
  0x17   :  { %2716 = vmatmul.msk.bf16.vlgmr.msra.gmra.mxu0 %vm105_vm0, %v3918_v33  ;;  %v3933_v5 = vld [vmem:[%s5180_s3 + $0x20] sm:$0xff]  ;;  %v3962_v9 = vld [vmem:[%s5180_s3 + $0x108] sm:$0xff]  ;;  %v3931_v10 = vld [vmem:[%s5180_s3 + $0x10] sm:$0xff]  ;;  %650 = vst.msk [vmem:[#allocation3 + $0x10] sm:$0xff] %vm647_vm4, %v4167_v43 }
  0x18   :  { %2718 = vmatmul.msk.bf16.vlgmr.msra.gmra.mxu1 %vm105_vm0, %v3918_v33  ;;  %334 = vmatpush.bf16.msra.mxu3 %v3950_v50  ;;  %v3961_v14 = vld [vmem:[%s5180_s3 + $0x100] sm:$0xff]  ;;  %v3930_v17 = vld [vmem:[%s5180_s3 + $0x8] sm:$0xff]  ;;  %651 = vst.msk [vmem:[#allocation3 + $0x18] sm:$0xff] %vm647_vm4, %v4167_v43 }
  0x19   :  { %601 = vmatpush.bf16.msrb.mxu1 %v3960_v37  ;;  %459 = vmatpush.bf16.msrb.mxu0 %v3940_v52  ;;  %v479_v20 = vld [vmem:[#allocation2 + $0x40] sm:$0x3]  ;;  %v166_v32 = vld [vmem:[#allocation2 + $0x8] sm:$0xc0]  ;;  %652 = vst.msk [vmem:[#allocation3 + $0x20] sm:$0xff] %vm647_vm4, %v4167_v43 }
  0x1a   :  { %314 = vmatpush.bf16.msra.mxu2 %v3944_v40  ;;  %v3929_v24 = vld [vmem:[%s5180_s3] sm:$0xff]  ;;  %v3970_v43 = vld [vmem:[%s5181_s4 + $0x24] sm:$0xf0] }
  0x1c   :  { %335 = vmatpush.bf16.msra.mxu3 %v3949_v54 }
  0x1d   :  { %602 = vmatpush.bf16.msrb.mxu1 %v3959_v39  ;;  %460 = vmatpush.bf16.msrb.mxu0 %v3939_v55 }
  0x1e   :  { %315 = vmatpush.bf16.msra.mxu2 %v3943_v42 }
  0x20   :  { %437 = vmatpush.bf16.msrb.mxu3 %v3936_v57 }
  0x21   :  { %603 = vmatpush.bf16.msrb.mxu1 %v3958_v41  ;;  %461 = vmatpush.bf16.msrb.mxu0 %v3938_v58 }
  0x22   :  { %316 = vmatpush.bf16.msra.mxu2 %v3942_v46 }
  0x24   :  { %438 = vmatpush.bf16.msrb.mxu3 %v3935_v59 }
  0x25   :  { %604 = vmatpush.bf16.msrb.mxu1 %v3957_v45  ;;  %462 = vmatpush.bf16.msrb.mxu0 %v3937_v61  ;;  %v480_v45 = vld [vmem:[#allocation2 + $0x48] sm:$0x3] }
  0x26   :  { %317 = vmatpush.bf16.msra.mxu2 %v3941_v49 }
  0x27   :  { %2717 = vmatmul.msk.bf16.gmra.mxu0 %vm105_vm0, %v54_v36 }
  0x28   :  { %2719 = vmatmul.msk.bf16.gmra.mxu1 %vm105_vm0, %v54_v36  ;;  %439 = vmatpush.bf16.msrb.mxu3 %v3934_v63 }
  0x29   :  { %605 = vmatpush.bf16.msrb.mxu1 %v3956_v47 }
  0x2a   :  { %623 = vmatpush.bf16.msrb.mxu2 %v3964_v0 }
  0x2c   :  { %440 = vmatpush.bf16.msrb.mxu3 %v3933_v5  ;;  %v3975_v5 = vld [vmem:[%s5181_s4 + $0x54] sm:$0xf] }
  0x2d   :  { %606 = vmatpush.bf16.msrb.mxu1 %v3955_v51 }
  0x2e   :  { %624 = vmatpush.bf16.msrb.mxu2 %v3963_v6  ;;  %v2944_v6 = vld [vmem:[%s5181_s4 + $0x58] sm:$0xf0] }
  0x30   :  { %441 = vmatpush.bf16.msrb.mxu3 %v3932_v8 }
  0x31   :  { %607 = vmatpush.bf16.msrb.mxu1 %v3954_v53  ;;  %v165_v53 = vld [vmem:[#allocation2] sm:$0xc0] }
  0x32   :  { %625 = vmatpush.bf16.msrb.mxu2 %v3962_v9  ;;  %v2947_v9 = vor.u32 %v3975_v5, %v2944_v6 }
  0x34   :  { %442 = vmatpush.bf16.msrb.mxu3 %v3931_v10  ;;  %738 = vmatpush.bf16.msra.mxu0 %v2947_v9 }
  0x35   :  { %608 = vmatpush.bf16.msrb.mxu1 %v3953_v56 }
  0x36   :  { %626 = vmatpush.bf16.msrb.mxu2 %v3961_v14  ;;  %v3976_v14 = vld [vmem:[%s5181_s4 + $0x54] sm:$0xf0] }
  0x38   :  { %443 = vmatpush.bf16.msrb.mxu3 %v3930_v17 }
  0x3c   :  { %444 = vmatpush.bf16.msrb.mxu3 %v3929_v24  ;;  %v3973_v24 = vld [vmem:[%s5181_s4 + $0x44] sm:$0xf] }
  0x94   :  { %v121_v2 = vpop.f32.mrf.mxu0 }
  0x95   :  { %v4374_v3 = vadd.f32 %v121_v2, %v43_v62  ;;  %v139_v4 = vpop.f32.mrf.mxu1 }
  0x96   :  { %v4382_v7 = vadd.f32 %v139_v4, %v44_v1 }
  0x97   :  { %159 = vst [vmem:[#allocation2 + $0x10] sm:$0xff] %v4374_v3  ;;  %v173_v56 = vpack.c.bf16 %v4374_v3, %v165_v53 }
  0x98   :  { %160 = vst.msk [vmem:[#allocation2 + $0x18] sm:$0xff] %vm149_vm1, %v4382_v7 }
  0x99   :  { %v351_v58 = vrot.slane %v173_v56, 3  ;;  %v3006_v56 = vld [vmem:[%s5181_s4 + $0x88] sm:$0xf0] }
  0x9c   :  { %v123_v11 = vpop.f32.mrf.mxu0 }
  0x9d   :  { %v4396_v12 = vadd.f32 %v123_v11, %v43_v62  ;;  %v141_v13 = vpop.f32.mrf.mxu1 }
  0x9e   :  { %v4401_v15 = vadd.f32 %v141_v13, %v44_v1  ;;  %v473_v18 = vld [vmem:[#allocation2 + $0x10] sm:$0xfc] }
  0x9f   :  { %v203_v16 = vpack.c.bf16 %v4396_v12, %v4374_v3  ;;  %v481_v23 = vpack.c.bf16 %v4396_v12, %v473_v18  ;;  %v168_v26 = vld [vmem:[#allocation2 + $0x18] sm:$0xff]  ;;  %v2942_v13 = vld [vmem:[%s5181_s4 + $0x50] sm:$0xf] }
  0xa0   :  { %162 = vst.msk [vmem:[#allocation2 + $0x28] sm:$0xff] %vm149_vm1, %v4401_v15  ;;  %v174_v37 = vpack.c.bf16 %v168_v26, %v166_v32  ;;  %v474_v48 = vld [vmem:[#allocation2 + $0x18] sm:$0xfc]  ;;  %v2943_v18 = vor.u32 %v3976_v14, %v2942_v13  ;;  %v640_v13 = vld [vmem:[%s5179_s2 + $0x1] ss:$0 sm:$0xff] }
  0xa1   :  { %318 = vmatmul.bf16.vlgmr.msra.gmra.mxu2 %v203_v16  ;;  %v515_v30 = vrot.slane %v481_v23, 1  ;;  %v2970_v16 = vld [vmem:[%s5181_s4 + $0x20] sm:$0xf]  ;;  %v3968_v32 = vld [vmem:[%s5181_s4 + $0x14] sm:$0xf0] }
  0xa2   :  { %v354_v40 = vrot.slane %v174_v37, 3  ;;  %v2964_v37 = vld [vmem:[%s5181_s4 + $0x18] sm:$0xf0] }
  0xa4   :  { %v126_v19 = vpop.f32.mrf.mxu0 }
  0xa5   :  { %v4410_v21 = vadd.f32 %v126_v19, %v43_v62  ;;  %v144_v22 = vpop.f32.mrf.mxu1  ;;  %v3969_v19 = vld [vmem:[%s5181_s4 + $0x24] sm:$0xf] }
  0xa6   :  { %v4416_v25 = vadd.f32 %v144_v22, %v44_v1  ;;  %v2971_v22 = vor.u32 %v3970_v43, %v2970_v16 }
  0xa7   :  { %163 = vst [vmem:[#allocation2 + $0x30] sm:$0xff] %v4410_v21  ;;  %v170_v27 = vld [vmem:[#allocation2 + $0x28] sm:$0xff]  ;;  %v483_v28 = vpack.c.bf16 %v479_v20, %v4410_v21  ;;  %v205_v36 = vpack.c.bf16 %v4410_v21, %v4410_v21 }
  0xa8   :  { %164 = vst.msk [vmem:[#allocation2 + $0x38] sm:$0xff] %vm149_vm1, %v4416_v25  ;;  %v204_v29 = vpack.c.bf16 %v170_v27, %v168_v26  ;;  %v482_v49 = vpack.c.bf16 %v170_v27, %v474_v48  ;;  %v2972_v20 = vld [vmem:[%s5181_s4 + $0x28] sm:$0xf0]  ;;  %792 = vmatpush.bf16.msra.mxu1 %v2971_v22  ;;  %v3966_v48 = vld [vmem:[%s5181_s4 + $0x4] sm:$0xf0] }
  0xa9   :  { %v516_v31 = vrot.slane %v483_v28, 1  ;;  %v2975_v23 = vor.u32 %v3969_v19, %v2972_v20  ;;  %v2936_v26 = vld [vmem:[%s5181_s4 + $0x48] sm:$0xf0]  ;;  %v3979_v22 = vld [vmem:[%s5181_s4 + $0x74] sm:$0xf] }
  0xaa   :  { %2792 = vmatmul.msk.bf16.vlgmr.msra.gmra.mxu3 %vm149_vm1, %v204_v29  ;;  %v518_v52 = vrot.slane %v482_v49, 1  ;;  %v2939_v29 = vor.u32 %v3973_v24, %v2936_v26 }
  0xab   :  { %v517_v33 = vsel %vm514_vm2, %v515_v30, %v516_v31  ;;  %720 = vmatpush.bf16.msra.mxu3 %v2943_v18  ;;  %810 = vmatpush.bf16.msra.mxu2 %v2975_v23  ;;  %v3974_v30 = vld [vmem:[%s5181_s4 + $0x44] sm:$0xf0] }
  0xac   :  { %v128_v34 = vpop.f32.mrf.mxu0  ;;  %609 = vmatmul.bf16.vlgmr.msrb.gmra.mxu1 %v517_v33  ;;  %739 = vmatpush.bf16.msra.mxu0 %v2939_v29 }
  0xad   :  { %v146_v35 = vpop.f32.mrf.mxu1 }
  0xae   :  { %v171_v51 = vld [vmem:[#allocation2 + $0x30] sm:$0x3f] }
  0xaf   :  { %v172_v38 = vld [vmem:[#allocation2 + $0x38] sm:$0x3f]  ;;  %v175_v55 = vpack.c.bf16 %v171_v51, %v4396_v12  ;;  %v3965_v51 = vld [vmem:[%s5181_s4 + $0x4] sm:$0xf] }
  0xb0   :  { %v176_v39 = vpack.c.bf16 %v172_v38, %v170_v27  ;;  %v202_v44 = vld [vmem:[#allocation2 + $0x38] sm:$0xff]  ;;  %v2934_v27 = vld [vmem:[%s5181_s4 + $0x40] sm:$0xf] }
  0xb1   :  { %323 = vmatmul.bf16.gmra.mxu2 %v205_v36  ;;  %v206_v46 = vpack.c.bf16 %v202_v44, %v202_v44  ;;  %v484_v47 = vpack.c.bf16 %v480_v45, %v202_v44  ;;  %v352_v57 = vrot.slane %v175_v55, 3  ;;  %v2935_v34 = vor.u32 %v3974_v30, %v2934_v27  ;;  %v3967_v36 = vld [vmem:[%s5181_s4 + $0x14] sm:$0xf]  ;;  %v3981_v55 = vld [vmem:[%s5181_s4 + $0x84] sm:$0xf] }
  0xb2   :  { %v355_v41 = vrot.slane %v176_v39, 3  ;;  %v2967_v38 = vor.u32 %v3967_v36, %v2964_v37  ;;  %v2996_v27 = vld [vmem:[%s5181_s4 + $0x70] sm:$0xf] }
  0xb3   :  { %v519_v50 = vrot.slane %v484_v47, 1  ;;  %v353_v59 = vsel %vm350_vm3, %v351_v58, %v352_v57  ;;  %721 = vmatpush.bf16.msra.mxu3 %v2935_v34  ;;  %v2954_v47 = vld [vmem:[%s5181_s4] sm:$0xf] }
  0xb4   :  { %v356_v42 = vsel %vm350_vm3, %v354_v40, %v355_v41  ;;  %v2926_v40 = vld [vmem:[%s5181_s4 + $0x30] sm:$0xf]  ;;  %811 = vmatpush.bf16.msra.mxu2 %v2967_v38  ;;  %v2988_v38 = vld [vmem:[%s5181_s4 + $0x60] sm:$0xf] }
  0xb5   :  { %2842 = vmatmul.msk.bf16.vlgmr.msrb.gmra.mxu0 %vm149_vm1, %v356_v42  ;;  %v520_v54 = vsel %vm514_vm2, %v518_v52, %v519_v50  ;;  %v3971_v42 = vld [vmem:[%s5181_s4 + $0x34] sm:$0xf]  ;;  %v2956_v52 = vld [vmem:[%s5181_s4 + $0x8] sm:$0xf0] }
  0xb6   :  { %v2959_v53 = vor.u32 %v3965_v51, %v2956_v52 }
  0xb8   :  { %812 = vmatpush.bf16.msra.mxu2 %v2959_v53 }
  0xba   :  { %2793 = vmatmul.msk.bf16.gmra.mxu3 %vm149_vm1, %v206_v46  ;;  %v2928_v46 = vld [vmem:[%s5181_s4 + $0x38] sm:$0xf0] }
  0xbb   :  { %v2931_v49 = vor.u32 %v3971_v42, %v2928_v46 }
  0xbc   :  { %614 = vmatmul.bf16.gmra.mxu1 %v516_v31  ;;  %v2962_v31 = vld [vmem:[%s5181_s4 + $0x10] sm:$0xf] }
  0xbd   :  { %v2963_v35 = vor.u32 %v3968_v32, %v2962_v31  ;;  %740 = vmatpush.bf16.msra.mxu0 %v2931_v49  ;;  %v2990_v32 = vld [vmem:[%s5181_s4 + $0x68] sm:$0xf0] }
  0xbf   :  { %793 = vmatpush.bf16.msra.mxu1 %v2963_v35 }
  0xc1   :  { %2916 = vmatmul.msk.bf16.vlgmr.msrb.gmra.mxu2 %vm149_vm1, %v520_v54 }
  0xc5   :  { %2843 = vmatmul.msk.bf16.gmra.mxu0 %vm149_vm1, %v355_v41  ;;  %v3972_v41 = vld [vmem:[%s5181_s4 + $0x34] sm:$0xf0] }
  0xc6   :  { %v2927_v45 = vor.u32 %v3972_v41, %v2926_v40 }
  0xc8   :  { %722 = vmatpush.bf16.msra.mxu3 %v2927_v45 }
  0xca   :  { %445 = vmatmul.bf16.vlgmr.msrb.gmra.mxu3 %v353_v59  ;;  %v3009_v59 = vor.u32 %v3981_v55, %v3006_v56  ;;  %v3989_v55 = vld [vmem:[%s5182_s5 + $0x30] sm:$0xff] }
  0xcc   :  { %894 = vmatpush.bf16.msrb.mxu0 %v3009_v59 }
  0xd1   :  { %2917 = vmatmul.msk.bf16.gmra.mxu2 %vm149_vm1, %v519_v50  ;;  %v2955_v50 = vor.u32 %v3966_v48, %v2954_v47 }
  0xd3   :  { %794 = vmatpush.bf16.msra.mxu1 %v2955_v50 }
  0xda   :  { %450 = vmatmul.bf16.gmra.mxu3 %v352_v57 }
 0x124   :  { %v4436_v60 = vpop.f32.mrf.mxu2 }
 0x129   :  { %v4438_v61 = vpop.f32.mrf.mxu1 }
 0x12c   :  { %v4440_v62 = vpop.f32.mrf.mxu2 }
 0x12d   :  { %v4442_v63 = vpop.f32.mrf.mxu3 }
 0x12e   :  { %v338_v57 = vadd.f32 %v4442_v63, %v4436_v60 }
 0x131   :  { %v4444_v0 = vpop.f32.mrf.mxu1 }
 0x132   :  { %v4446_v1 = vpop.f32.mrf.mxu0 }
 0x134   :  { %v4448_v2 = vpop.f32.mrf.mxu2 }
 0x135   :  { %v4450_v4 = vpop.f32.mrf.mxu3 }
 0x136   :  { %v340_v16 = vadd.f32 %v4450_v4, %v4440_v62  ;;  %v2998_v62 = vld [vmem:[%s5181_s4 + $0x78] sm:$0xf0]  ;;  %v3004_v4 = vld [vmem:[%s5181_s4 + $0x80] sm:$0xf] }
 0x137   :  { %v3001_v26 = vor.u32 %v3979_v22, %v2998_v62  ;;  %v4011_v22 = vld [vmem:[%s5182_s5 + $0xe0] sm:$0xff]  ;;  %v4038_v62 = vld [vmem:[%s5182_s5 + $0x1b8] sm:$0xff] }
 0x139   :  { %v4462_v8 = vpop.f32.mrf.mxu1  ;;  %895 = vmatpush.bf16.msrb.mxu0 %v3001_v26  ;;  %v3997_v26 = vld [vmem:[%s5182_s5 + $0x70] sm:$0xff] }
 0x13a   :  { %v4466_v10 = vpop.f32.mrf.mxu0 }
 0x13c   :  { %v326_v11 = vpop.f32.mrf.mxu2 }
 0x13d   :  { %v4481_v17 = vpop.f32.mrf.mxu3 }
 0x13e   :  { %v343_v23 = vadd.f32 %v4481_v17, %v4448_v2  ;;  %v3977_v2 = vld [vmem:[%s5181_s4 + $0x64] sm:$0xf] }
 0x13f   :  { %v2993_v35 = vor.u32 %v3977_v2, %v2990_v32  ;;  %v4008_v32 = vld [vmem:[%s5182_s5 + $0xc8] sm:$0xff] }
 0x141   :  { %v617_v28 = vpop.f32.mrf.mxu1  ;;  %896 = vmatpush.bf16.msrb.mxu0 %v2993_v35  ;;  %v3995_v35 = vld [vmem:[%s5182_s5 + $0x60] sm:$0xff] }
 0x142   :  { %v4510_v33 = vpop.f32.mrf.mxu0  ;;  %v3980_v28 = vld [vmem:[%s5181_s4 + $0x74] sm:$0xf0] }
 0x143   :  { %v2997_v34 = vor.u32 %v3980_v28, %v2996_v27  ;;  %v4009_v27 = vld [vmem:[%s5182_s5 + $0xd0] sm:$0xff]  ;;  %v4036_v28 = vld [vmem:[%s5182_s5 + $0x1a8] sm:$0xff] }
 0x144   :  { %v628_v39 = vpop.f32.mrf.mxu2 }
 0x145   :  { %v344_v44 = vpop.f32.mrf.mxu3  ;;  %v629_v11 = vadd.f32 %v628_v39, %v4438_v61  ;;  %v3978_v39 = vld [vmem:[%s5181_s4 + $0x64] sm:$0xf0] }
 0x146   :  { %v2989_v41 = vor.u32 %v3978_v39, %v2988_v38  ;;  %v4017_v38 = vld [vmem:[%s5182_s5 + $0x110] sm:$0xff] }
 0x14a   :  { %v471_v54 = vpop.f32.mrf.mxu0 }
 0x14b   :  { %v3990_v54 = vld [vmem:[%s5182_s5 + $0x38] sm:$0xff] }
 0x14c   :  { %v630_v58 = vpop.f32.mrf.mxu2 }
 0x14d   :  { %v446_v5 = vpop.f32.mrf.mxu3 }
 0x14e   :  { %v447_v6 = vadd.f32 %v446_v5, %v338_v57 }
 0x150   :  { %v465_v9 = vadd.f32 %v4446_v1, %v447_v6  ;;  %v631_v1 = vadd.f32 %v630_v58, %v4444_v0  ;;  %v3982_v0 = vld [vmem:[%s5181_s4 + $0x84] sm:$0xf0] }
 0x151   :  { %v3005_v30 = vor.u32 %v3982_v0, %v3004_v4  ;;  %v3988_v6 = vld [vmem:[%s5182_s5 + $0x28] sm:$0xff]  ;;  %v3998_v4 = vld [vmem:[%s5182_s5 + $0x78] sm:$0xff] }
 0x152   :  { %v637_v14 = vadd.f32 %v629_v11, %v465_v9  ;;  %v3987_v9 = vld [vmem:[%s5182_s5 + $0x20] sm:$0xff]  ;;  %v4002_v11 = vld [vmem:[%s5182_s5 + $0x98] sm:$0xff]  ;;  %v4004_v0 = vld [vmem:[%s5182_s5 + $0xa8] sm:$0xff] }
 0x153   :  { %876 = vmatpush.bf16.msrb.mxu3 %v3005_v30  ;;  %1069 = vmatpush.bf16.msrb.mxu1 %v4002_v11  ;;  %v3996_v30 = vld [vmem:[%s5182_s5 + $0x68] sm:$0xff] }
 0x154   :  { %v641_v18 = vadd.f32 %v640_v13, %v637_v14  ;;  %v633_v43 = vpop.f32.mrf.mxu2  ;;  %v4014_v14 = vld [vmem:[%s5182_s5 + $0xf8] sm:$0xff] }
 0x155   :  { %v448_v60 = vpop.f32.mrf.mxu3  ;;  %v634_v37 = vadd.f32 %v633_v43, %v4462_v8  ;;  %v4013_v43 = vld [vmem:[%s5182_s5 + $0xf0] sm:$0xff] }
 0x156   :  { %v644_v63 = vmax.f32 %v641_v18, 0.0  ;;  %v449_v19 = vadd.f32 %v448_v60, %v340_v16  ;;  %v4001_v16 = vld [vmem:[%s5182_s5 + $0x90] sm:$0xff]  ;;  %v4000_v60 = vld [vmem:[%s5182_s5 + $0x88] sm:$0xff] }
 0x157   :  { %877 = vmatpush.bf16.msrb.mxu3 %v2997_v34  ;;  %1070 = vmatpush.bf16.msrb.mxu1 %v4001_v16  ;;  %v3985_v18 = vld [vmem:[%s5182_s5 + $0x10] sm:$0xff]  ;;  %v4035_v34 = vld [vmem:[%s5182_s5 + $0x1a0] sm:$0xff] }
 0x158   :  { %653 = vst.msk [vmem:[#allocation3 + $0x8] sm:$0xff] %vm647_vm4, %v644_v63  ;;  %v467_v20 = vadd.f32 %v4466_v10, %v449_v19  ;;  %v3984_v63 = vld [vmem:[%s5182_s5 + $0x8] sm:$0xff] }
 0x159   :  { %v4012_v19 = vld [vmem:[%s5182_s5 + $0xe8] sm:$0xff] }
 0x15a   :  { %v638_v61 = vadd.f32 %v631_v1, %v467_v20  ;;  %v3999_v20 = vld [vmem:[%s5182_s5 + $0x80] sm:$0xff]  ;;  %v4006_v1 = vld [vmem:[%s5182_s5 + $0xb8] sm:$0xff] }
 0x15b   :  { %878 = vmatpush.bf16.msrb.mxu3 %v2989_v41  ;;  %1071 = vmatpush.bf16.msrb.mxu1 %v4000_v60  ;;  %v4034_v41 = vld [vmem:[%s5182_s5 + $0x198] sm:$0xff] }
 0x15c   :  { %v642_v24 = vadd.f32 %v640_v13, %v638_v61  ;;  %v635_v10 = vpop.f32.mrf.mxu2  ;;  %v3983_v61 = vld [vmem:[%s5182_s5] sm:$0xff]  ;;  %1086 = vmatpush.bf16.msrb.mxu2 %v4006_v1 }
 0x15d   :  { %v451_v29 = vpop.f32.mrf.mxu3  ;;  %v4037_v10 = vld [vmem:[%s5182_s5 + $0x1b0] sm:$0xff] }
 0x15e   :  { %v645_v17 = vmax.f32 %v642_v24, 0.0  ;;  %v452_v31 = vadd.f32 %v451_v29, %v343_v23  ;;  %v4005_v23 = vld [vmem:[%s5182_s5 + $0xb0] sm:$0xff]  ;;  %v4010_v24 = vld [vmem:[%s5182_s5 + $0xd8] sm:$0xff] }
 0x15f   :  { %v667_v46 = vld [vmem:[#allocation3 + $0x8] sm:$0xff]  ;;  %1072 = vmatpush.bf16.msrb.mxu1 %v3999_v20 }
 0x160   :  { %654 = vst.msk [vmem:[#allocation3 + $0x10] sm:$0xff] %vm647_vm4, %v645_v17  ;;  %v470_v36 = vadd.f32 %v4510_v33, %v452_v31  ;;  %v656_v33 = vld [vmem:[#allocation3 + $0x6] sm:$0xff]  ;;  %1087 = vmatpush.bf16.msrb.mxu2 %v4005_v23  ;;  %v4003_v17 = vld [vmem:[%s5182_s5 + $0xa0] sm:$0xff] }
 0x161   :  { %v4018_v31 = vld [vmem:[%s5182_s5 + $0x118] sm:$0xff] }
 0x162   :  { %v639_v40 = vadd.f32 %v634_v37, %v470_v36  ;;  %v3994_v36 = vld [vmem:[%s5182_s5 + $0x58] sm:$0xff] }
 0x163   :  { %1073 = vmatpush.bf16.msrb.mxu1 %v3998_v4 }
 0x164   :  { %v643_v42 = vadd.f32 %v640_v13, %v639_v40  ;;  %v3986_v13 = vld [vmem:[%s5182_s5 + $0x18] sm:$0xff]  ;;  %1088 = vmatpush.bf16.msrb.mxu2 %v4004_v0  ;;  %v4007_v40 = vld [vmem:[%s5182_s5 + $0xc0] sm:$0xff] }
 0x165   :  { %v453_v44 = vpop.f32.mrf.mxu3 }
 0x166   :  { %v646_v45 = vmax.f32 %v643_v42, 0.0  ;;  %v4042_v44 = vld [vmem:[%s5182_s5 + $0x1d8] sm:$0xff] }
 0x167   :  { %v668_v47 = vld [vmem:[#allocation3 + $0x10] sm:$0xff]  ;;  %1074 = vmatpush.bf16.msrb.mxu1 %v3997_v26  ;;  %v4030_v26 = vld [vmem:[%s5182_s5 + $0x178] sm:$0xff] }
 0x168   :  { %v657_v48 = vld [vmem:[#allocation3 + $0xe] sm:$0xff]  ;;  %655 = vst.msk [vmem:[#allocation3 + $0x18] sm:$0xff] %vm647_vm4, %v646_v45  ;;  %v670_v8 = vpack.c.bf16 %v668_v47, %v667_v46  ;;  %1089 = vmatpush.bf16.msrb.mxu2 %v4003_v17  ;;  %v3993_v46 = vld [vmem:[%s5182_s5 + $0x50] sm:$0xff]  ;;  %v4016_v47 = vld [vmem:[%s5182_s5 + $0x108] sm:$0xff] }
 0x169   :  { %v659_v49 = vpack.c.bf16 %v657_v48, %v656_v33  ;;  %v823_v57 = vld [vmem:[#allocation3 + $0xa] sm:$0xff]  ;;  %v4033_v33 = vld [vmem:[%s5182_s5 + $0x190] sm:$0xff] }
 0x16a   :  { %2948 = vmatmul.msk.bf16.vlgmr.msra.gmra.mxu3 %vm647_vm4, %v670_v8  ;;  %2950 = vmatmul.msk.bf16.vlgmr.msra.gmra.mxu0 %vm647_vm4, %v670_v8  ;;  %v4041_v48 = vld [vmem:[%s5182_s5 + $0x1d0] sm:$0xff]  ;;  %v3992_v8 = vld [vmem:[%s5182_s5 + $0x48] sm:$0xff] }
 0x16b   :  { %2976 = vmatmul.msk.bf16.vlgmr.msra.gmra.mxu1 %vm647_vm4, %v659_v49  ;;  %2978 = vmatmul.msk.bf16.vlgmr.msra.gmra.mxu2 %vm647_vm4, %v659_v49 }
 0x16c   :  { %1170 = vmatpush.bf16.msra.mxu3 %v3990_v54  ;;  %1299 = vmatpush.bf16.msra.mxu0 %v4014_v14  ;;  %v4040_v54 = vld [vmem:[%s5182_s5 + $0x1c8] sm:$0xff] }
 0x16d   :  { %1075 = vmatpush.bf16.msrb.mxu1 %v3996_v30  ;;  %1316 = vmatpush.bf16.msra.mxu2 %v4018_v31  ;;  %v3014_v14 = vld [vmem:[%s5179_s2 + $0x2] ss:$8 sm:$0x3]  ;;  %v4029_v30 = vld [vmem:[%s5182_s5 + $0x170] sm:$0xff] }
 0x16e   :  { %v4768_v4 = vperm.slane %v3014_v14, 0 }
 0x16f   :  { %v669_v50 = vld [vmem:[#allocation3 + $0x18] sm:$0xff] }
 0x170   :  { %v658_v51 = vld [vmem:[#allocation3 + $0x16] sm:$0xff]  ;;  %v671_v52 = vpack.c.bf16 %v669_v50, %v669_v50  ;;  %1171 = vmatpush.bf16.msra.mxu3 %v3989_v55  ;;  %1300 = vmatpush.bf16.msra.mxu0 %v4013_v43 }
 0x171   :  { %v660_v53 = vpack.c.bf16 %v658_v51, %v658_v51  ;;  %v824_v56 = vld [vmem:[#allocation3 + $0x12] sm:$0xff]  ;;  %v825_v59 = vld [vmem:[#allocation3 + $0x1a] sm:$0xff]  ;;  %1076 = vmatpush.bf16.msrb.mxu1 %v3995_v35  ;;  %1317 = vmatpush.bf16.msra.mxu2 %v4017_v38 }
 0x172   :  { %v826_v58 = vpack.c.bf16 %v824_v56, %v823_v57  ;;  %v827_v5 = vpack.c.bf16 %v825_v59, %v825_v59  ;;  %v4015_v50 = vld [vmem:[%s5182_s5 + $0x100] sm:$0xff] }
 0x173   :  { %v3991_v56 = vld [vmem:[%s5182_s5 + $0x40] sm:$0xff] }
 0x174   :  { %1172 = vmatpush.bf16.msra.mxu3 %v3988_v6  ;;  %1301 = vmatpush.bf16.msra.mxu0 %v4012_v19  ;;  %v4031_v57 = vld [vmem:[%s5182_s5 + $0x180] sm:$0xff] }
 0x175   :  { %1187 = vmatpush.bf16.msra.mxu1 %v3994_v36  ;;  %1318 = vmatpush.bf16.msra.mxu2 %v4016_v47  ;;  %v4053_v47 = vld [vmem:[%s5182_s5 + $0x230] sm:$0xff] }
 0x178   :  { %1173 = vmatpush.bf16.msra.mxu3 %v3987_v9  ;;  %1302 = vmatpush.bf16.msra.mxu0 %v4011_v22 }
 0x179   :  { %1188 = vmatpush.bf16.msra.mxu1 %v3993_v46  ;;  %1319 = vmatpush.bf16.msra.mxu2 %v4015_v50  ;;  %v4052_v50 = vld [vmem:[%s5182_s5 + $0x228] sm:$0xff] }
 0x17a   :  { %2949 = vmatmul.msk.bf16.gmra.mxu3 %vm647_vm4, %v671_v52  ;;  %2951 = vmatmul.msk.bf16.gmra.mxu0 %vm647_vm4, %v671_v52  ;;  %v4032_v52 = vld [vmem:[%s5182_s5 + $0x188] sm:$0xff] }
 0x17b   :  { %2977 = vmatmul.msk.bf16.gmra.mxu1 %vm647_vm4, %v660_v53  ;;  %2979 = vmatmul.msk.bf16.gmra.mxu2 %vm647_vm4, %v660_v53 }
 0x17c   :  { %1174 = vmatpush.bf16.msra.mxu3 %v3986_v13  ;;  %1303 = vmatpush.bf16.msra.mxu0 %v4010_v24 }
 0x17d   :  { %1189 = vmatpush.bf16.msra.mxu1 %v3992_v8 }
 0x180   :  { %1175 = vmatpush.bf16.msra.mxu3 %v3985_v18  ;;  %1304 = vmatpush.bf16.msra.mxu0 %v4009_v27 }
 0x181   :  { %1190 = vmatpush.bf16.msra.mxu1 %v3991_v56 }
 0x184   :  { %1176 = vmatpush.bf16.msra.mxu3 %v3984_v63  ;;  %1305 = vmatpush.bf16.msra.mxu0 %v4008_v32  ;;  %v923_v63 = vperm.slane %v3014_v14, 1  ;;  %v4022_v14 = vld [vmem:[%s5182_s5 + $0x138] sm:$0xff] }
 0x188   :  { %1177 = vmatpush.bf16.msra.mxu3 %v3983_v61  ;;  %1306 = vmatpush.bf16.msra.mxu0 %v4007_v40  ;;  %v4028_v40 = vld [vmem:[%s5182_s5 + $0x168] sm:$0xff] }
 0x18a   :  { %3010 = vmatmul.msk.bf16.vlgmr.msrb.gmra.mxu3 %vm647_vm4, %v826_v58  ;;  %3012 = vmatmul.msk.bf16.vlgmr.msrb.gmra.mxu0 %vm647_vm4, %v826_v58  ;;  %v4039_v58 = vld [vmem:[%s5182_s5 + $0x1c0] sm:$0xff] }
 0x18c   :  { %1558 = vmatpush.bf16.msrb.mxu3 %v4038_v62  ;;  %1575 = vmatpush.bf16.msrb.mxu0 %v4042_v44 }
 0x190   :  { %1559 = vmatpush.bf16.msrb.mxu3 %v4037_v10  ;;  %1576 = vmatpush.bf16.msrb.mxu0 %v4041_v48 }
 0x194   :  { %1560 = vmatpush.bf16.msrb.mxu3 %v4036_v28  ;;  %1577 = vmatpush.bf16.msrb.mxu0 %v4040_v54 }
 0x198   :  { %1561 = vmatpush.bf16.msrb.mxu3 %v4035_v34  ;;  %1578 = vmatpush.bf16.msrb.mxu0 %v4039_v58  ;;  %v4026_v34 = vld [vmem:[%s5182_s5 + $0x158] sm:$0xff]  ;;  %v4051_v58 = vld [vmem:[%s5182_s5 + $0x220] sm:$0xff] }
 0x19a   :  { %3011 = vmatmul.msk.bf16.gmra.mxu3 %vm647_vm4, %v827_v5  ;;  %3013 = vmatmul.msk.bf16.gmra.mxu0 %vm647_vm4, %v827_v5 }
 0x19c   :  { %1562 = vmatpush.bf16.msrb.mxu3 %v4034_v41  ;;  %v4065_v41 = vld [vmem:[%s5182_s5 + $0x290] sm:$0xff] }
 0x1a0   :  { %1563 = vmatpush.bf16.msrb.mxu3 %v4033_v33 }
 0x1a4   :  { %1564 = vmatpush.bf16.msrb.mxu3 %v4032_v52  ;;  %v4050_v52 = vld [vmem:[%s5182_s5 + $0x218] sm:$0xff] }
 0x1a8   :  { %1565 = vmatpush.bf16.msrb.mxu3 %v4031_v57  ;;  %v4023_v57 = vld [vmem:[%s5182_s5 + $0x140] sm:$0xff] }
 0x1e7   :  { %v4686_v29 = vpop.f32.mrf.mxu0 }
 0x1e8   :  { %v4691_v2 = vpop.f32.mrf.mxu1 }
 0x1ed   :  { %v724_v37 = vpop.f32.mrf.mxu3 }
 0x1ee   :  { %v814_v39 = vpop.f32.mrf.mxu2  ;;  %v797_v20 = vadd.f32 %v4691_v2, %v724_v37  ;;  %v4054_v37 = vld [vmem:[%s5182_s5 + $0x238] sm:$0xff] }
 0x1ef   :  { %v4720_v42 = vpop.f32.mrf.mxu0  ;;  %v815_v16 = vadd.f32 %v814_v39, %v4686_v29 }
 0x1f0   :  { %v798_v45 = vpop.f32.mrf.mxu1 }
 0x1f5   :  { %v726_v49 = vpop.f32.mrf.mxu3 }
 0x1f6   :  { %v816_v51 = vpop.f32.mrf.mxu2  ;;  %v799_v27 = vadd.f32 %v798_v45, %v726_v49  ;;  %v4025_v45 = vld [vmem:[%s5182_s5 + $0x150] sm:$0xff] }
 0x1f7   :  { %v747_v53 = vpop.f32.mrf.mxu0  ;;  %v817_v31 = vadd.f32 %v816_v51, %v4720_v42 }
 0x1f8   :  { %v4749_v55 = vpop.f32.mrf.mxu1 }
 0x1fd   :  { %v4760_v59 = vpop.f32.mrf.mxu3 }
 0x1fe   :  { %v819_v5 = vpop.f32.mrf.mxu2 }
 0x1ff   :  { %v820_v6 = vadd.f32 %v819_v5, %v747_v53  ;;  %v749_v9 = vpop.f32.mrf.mxu0  ;;  %v4063_v53 = vld [vmem:[%s5182_s5 + $0x280] sm:$0xff] }
 0x200   :  { %v803_v11 = vpop.f32.mrf.mxu1  ;;  %v4049_v9 = vld [vmem:[%s5182_s5 + $0x210] sm:$0xff] }
 0x201   :  { %v4086_v11 = vld [vmem:[%s5182_s5 + $0x338] sm:$0xff] }
 0x205   :  { %v731_v13 = vpop.f32.mrf.mxu3 }
 0x206   :  { %v821_v18 = vpop.f32.mrf.mxu2 }
 0x207   :  { %v898_v43 = vpop.f32.mrf.mxu0 }
 0x208   :  { %v908_v60 = vadd.f32 %v898_v43, %v815_v16  ;;  %v4074_v16 = vld [vmem:[%s5182_s5 + $0x2d8] sm:$0xff]  ;;  %v4048_v43 = vld [vmem:[%s5182_s5 + $0x208] sm:$0xff] }
 0x20a   :  { %v914_v19 = vadd.f32 %v908_v60, %v4382_v7  ;;  %v4085_v60 = vld [vmem:[%s5182_s5 + $0x330] sm:$0xff] }
 0x20c   :  { %v927_v1 = vadd.f32 %v923_v63, %v914_v19  ;;  %v4073_v19 = vld [vmem:[%s5182_s5 + $0x2d0] sm:$0xff] }
 0x20d   :  { %v880_v61 = vpop.f32.mrf.mxu3 }
 0x20e   :  { %v933_v22 = vmax.f32 %v927_v1, 0.0  ;;  %v907_v62 = vadd.f32 %v880_v61, %v797_v20  ;;  %v4047_v20 = vld [vmem:[%s5182_s5 + $0x200] sm:$0xff]  ;;  %v4084_v1 = vld [vmem:[%s5182_s5 + $0x328] sm:$0xff] }
 0x20f   :  { %v900_v23 = vpop.f32.mrf.mxu0  ;;  %v4020_v61 = vld [vmem:[%s5182_s5 + $0x128] sm:$0xff] }
 0x210   :  { %v4770_v24 = vpack.c.bf16 %v933_v22, %v933_v22  ;;  %v913_v10 = vadd.f32 %v907_v62, %v4374_v3  ;;  %v4066_v3 = vld [vmem:[%s5182_s5 + $0x298] sm:$0xff]  ;;  %v910_v38 = vadd.f32 %v900_v23, %v817_v31  ;;  %v4072_v22 = vld [vmem:[%s5182_s5 + $0x2c8] sm:$0xff]  ;;  %v4083_v23 = vld [vmem:[%s5182_s5 + $0x320] sm:$0xff] }
 0x211   :  { %v4046_v62 = vld [vmem:[%s5182_s5 + $0x1f8] sm:$0xff]  ;;  %v4044_v31 = vld [vmem:[%s5182_s5 + $0x1e8] sm:$0xff] }
 0x212   :  { %v926_v0 = vadd.f32 %v4768_v4, %v913_v10  ;;  %v992_v7 = vrot.slane %v4770_v24, 1  ;;  %v916_v33 = vadd.f32 %v910_v38, %v4401_v15  ;;  %v4024_v15 = vld [vmem:[%s5182_s5 + $0x148] sm:$0xff]  ;;  %v1222_v56 = vrot.slane %v4770_v24, 2 }
 0x213   :  { %v1352_v10 = vrot.slane %v4770_v24, 3 }
 0x214   :  { %v932_v28 = vmax.f32 %v926_v0, 0.0  ;;  %3087 = vmatmul.msk.bf16.vlgmr.msrb.gmra.mxu2 %vm149_vm1, %v992_v7  ;;  %v929_v51 = vadd.f32 %v923_v63, %v916_v33  ;;  %v4071_v0 = vld [vmem:[%s5182_s5 + $0x2c0] sm:$0xff]  ;;  %v4062_v7 = vld [vmem:[%s5182_s5 + $0x278] sm:$0xff] }
 0x215   :  { %v882_v29 = vpop.f32.mrf.mxu3  ;;  %1446 = vmatpush.bf16.msrb.mxu2 %v4030_v26  ;;  %v4019_v26 = vld [vmem:[%s5182_s5 + $0x120] sm:$0xff]  ;;  %v4058_v33 = vld [vmem:[%s5182_s5 + $0x258] sm:$0xff] }
 0x216   :  { %v4785_v2 = vpack.c.bf16 %v932_v28, %v932_v28  ;;  %v909_v17 = vadd.f32 %v882_v29, %v799_v27  ;;  %v935_v5 = vmax.f32 %v929_v51, 0.0  ;;  %v802_v27 = vadd.f32 %v4749_v55, %v4760_v59  ;;  %v4082_v28 = vld [vmem:[%s5182_s5 + $0x318] sm:$0xff]  ;;  %v4061_v59 = vld [vmem:[%s5182_s5 + $0x270] sm:$0xff]  ;;  %v4075_v51 = vld [vmem:[%s5182_s5 + $0x2e0] sm:$0xff] }
 0x217   :  { %v903_v32 = vpop.f32.mrf.mxu0  ;;  %v4070_v55 = vld [vmem:[%s5182_s5 + $0x2b8] sm:$0xff] }
 0x218   :  { %v912_v35 = vadd.f32 %v903_v32, %v820_v6  ;;  %1178 = vmatmul.bf16.vlgmr.msra.gmra.mxu3 %v4785_v2  ;;  %v991_v36 = vrot.slane %v4785_v2, 1  ;;  %v1221_v39 = vrot.slane %v4785_v2, 2  ;;  %v915_v42 = vadd.f32 %v909_v17, %v4396_v12  ;;  %v4027_v12 = vld [vmem:[%s5182_s5 + $0x160] sm:$0xff] }
 0x219   :  { %1447 = vmatpush.bf16.msrb.mxu2 %v4029_v30  ;;  %1837 = vmatpush.bf16.msra.mxu3 %v4066_v3  ;;  %v4858_v18 = vpack.c.bf16 %v935_v5, %v935_v5  ;;  %v1351_v3 = vrot.slane %v4785_v2, 3  ;;  %v4081_v2 = vld [vmem:[%s5182_s5 + $0x310] sm:$0xff]  ;;  %v4111_v5 = vld [vmem:[%s5182_s5 + $0x400] sm:$0xff] }
 0x21a   :  { %v918_v44 = vadd.f32 %v912_v35, %v4416_v25  ;;  %1077 = vmatmul.bf16.vlgmr.msrb.gmra.mxu1 %v991_v36  ;;  %1307 = vmatmul.bf16.vlgmr.msra.gmra.mxu0 %v1221_v39  ;;  %v4064_v25 = vld [vmem:[%s5182_s5 + $0x288] sm:$0xff]  ;;  %v928_v8 = vadd.f32 %v4768_v4, %v915_v42  ;;  %v4043_v36 = vld [vmem:[%s5182_s5 + $0x1e0] sm:$0xff] }
 0x21b   :  { %1429 = vmatpush.bf16.msrb.mxu1 %v4026_v34  ;;  %1707 = vmatpush.bf16.msra.mxu0 %v4054_v37  ;;  %v1743_v30 = vrot.slane %v4858_v18, 2  ;;  %v1613_v17 = vrot.slane %v4858_v18, 1  ;;  %v4069_v34 = vld [vmem:[%s5182_s5 + $0x2b0] sm:$0xff]  ;;  %v4060_v35 = vld [vmem:[%s5182_s5 + $0x268] sm:$0xff] }
 0x21c   :  { %v4808_v46 = vadd.f32 %v923_v63, %v918_v44  ;;  %v934_v54 = vmax.f32 %v928_v8, 0.0  ;;  %v4021_v63 = vld [vmem:[%s5182_s5 + $0x130] sm:$0xff]  ;;  %v4080_v37 = vld [vmem:[%s5182_s5 + $0x308] sm:$0xff] }
 0x21d   :  { %v4814_v48 = vpop.f32.mrf.mxu3  ;;  %1448 = vmatpush.bf16.msrb.mxu2 %v4028_v40  ;;  %1838 = vmatpush.bf16.msra.mxu3 %v4065_v41  ;;  %v4068_v39 = vld [vmem:[%s5182_s5 + $0x2a8] sm:$0xff]  ;;  %v4059_v40 = vld [vmem:[%s5182_s5 + $0x260] sm:$0xff]  ;;  %v4077_v41 = vld [vmem:[%s5182_s5 + $0x2f0] sm:$0xff] }
 0x21e   :  { %v4849_v13 = vpack.c.bf16 %v934_v54, %v934_v54  ;;  %v911_v29 = vadd.f32 %v4814_v48, %v802_v27  ;;  %v4102_v48 = vld [vmem:[%s5182_s5 + $0x3b8] sm:$0xff]  ;;  %v4113_v8 = vld [vmem:[%s5182_s5 + $0x410] sm:$0xff]  ;;  %v4056_v54 = vld [vmem:[%s5182_s5 + $0x248] sm:$0xff] }
 0x21f   :  { %1430 = vmatpush.bf16.msrb.mxu1 %v4025_v45  ;;  %v905_v49 = vpop.f32.mrf.mxu0  ;;  %1708 = vmatpush.bf16.msra.mxu0 %v4053_v47  ;;  %v4114_v45 = vld [vmem:[%s5182_s5 + $0x418] sm:$0xff]  ;;  %v4067_v47 = vld [vmem:[%s5182_s5 + $0x2a0] sm:$0xff]  ;;  %v4092_v27 = vld [vmem:[%s5182_s5 + $0x368] sm:$0xff] }
 0x220   :  { %v917_v32 = vadd.f32 %v911_v29, %v4410_v21  ;;  %v4078_v21 = vld [vmem:[%s5182_s5 + $0x2f8] sm:$0xff]  ;;  %v1612_v44 = vrot.slane %v4849_v13, 1  ;;  %v4057_v49 = vld [vmem:[%s5182_s5 + $0x250] sm:$0xff]  ;;  %v4091_v29 = vld [vmem:[%s5182_s5 + $0x360] sm:$0xff] }
 0x221   :  { %1449 = vmatpush.bf16.msrb.mxu2 %v4027_v12  ;;  %1839 = vmatpush.bf16.msra.mxu3 %v4064_v25  ;;  %v4076_v12 = vld [vmem:[%s5182_s5 + $0x2e8] sm:$0xff] }
 0x222   :  { %v930_v38 = vadd.f32 %v4768_v4, %v917_v32  ;;  %v4079_v4 = vld [vmem:[%s5182_s5 + $0x300] sm:$0xff]  ;;  %v4124_v32 = vld [vmem:[%s5182_s5 + $0x468] sm:$0xff] }
 0x223   :  { %1431 = vmatpush.bf16.msrb.mxu1 %v4024_v15  ;;  %1709 = vmatpush.bf16.msra.mxu0 %v4052_v50  ;;  %v1872_v15 = vrot.slane %v4849_v13, 3  ;;  %v4101_v50 = vld [vmem:[%s5182_s5 + $0x3b0] sm:$0xff] }
 0x224   :  { %3209 = vmatmul.msk.bf16.vlgmr.msra.gmra.mxu2 %vm149_vm1, %v1222_v56  ;;  %v936_v42 = vmax.f32 %v930_v38, 0.0  ;;  %v4100_v56 = vld [vmem:[%s5182_s5 + $0x3a8] sm:$0xff] }
 0x225   :  { %1690 = vmatpush.bf16.msra.mxu2 %v4050_v52  ;;  %v887_v6 = vpop.f32.mrf.mxu3  ;;  %1840 = vmatpush.bf16.msra.mxu3 %v4063_v53  ;;  %v4098_v52 = vld [vmem:[%s5182_s5 + $0x398] sm:$0xff]  ;;  %v4112_v53 = vld [vmem:[%s5182_s5 + $0x408] sm:$0xff] }
 0x226   :  { %v4976_v25 = vpack.c.bf16 %v936_v42, %v936_v42  ;;  %v4055_v6 = vld [vmem:[%s5182_s5 + $0x240] sm:$0xff] }
 0x227   :  { %1432 = vmatpush.bf16.msrb.mxu1 %v4023_v57  ;;  %1710 = vmatpush.bf16.msra.mxu0 %v4051_v58  ;;  %v937_v57 = vmax.f32 %v4808_v46, 0.0  ;;  %v4097_v58 = vld [vmem:[%s5182_s5 + $0x390] sm:$0xff]  ;;  %v4099_v46 = vld [vmem:[%s5182_s5 + $0x3a0] sm:$0xff] }
 0x228   :  { %1566 = vmatmul.bf16.vlgmr.msrb.gmra.mxu3 %v4849_v13 }
 0x229   :  { %1691 = vmatpush.bf16.msra.mxu2 %v4049_v9  ;;  %2079 = vmatpush.bf16.msrb.mxu3 %v4086_v11  ;;  %v4090_v9 = vld [vmem:[%s5182_s5 + $0x358] sm:$0xff] }
 0x22a   :  { %3136 = vmatmul.msk.bf16.vlgmr.msra.gmra.mxu1 %vm149_vm1, %v4770_v24  ;;  %3355 = vmatmul.msk.bf16.vlgmr.msrb.gmra.mxu0 %vm149_vm1, %v4858_v18  ;;  %v4045_v24 = vld [vmem:[%s5182_s5 + $0x1f0] sm:$0xff]  ;;  %v4122_v11 = vld [vmem:[%s5182_s5 + $0x458] sm:$0xff] }
 0x22b   :  { %1433 = vmatpush.bf16.msrb.mxu1 %v4022_v14  ;;  %1950 = vmatpush.bf16.msrb.mxu0 %v4074_v16  ;;  %v5023_v14 = vpack.c.bf16 %v937_v57, %v937_v57  ;;  %v1873_v16 = vrot.slane %v4858_v18, 3  ;;  %v4121_v18 = vld [vmem:[%s5182_s5 + $0x450] sm:$0xff] }
 0x22d   :  { %1692 = vmatpush.bf16.msra.mxu2 %v4048_v43  ;;  %2080 = vmatpush.bf16.msrb.mxu3 %v4085_v60  ;;  %v4096_v43 = vld [vmem:[%s5182_s5 + $0x388] sm:$0xff]  ;;  %v1742_v60 = vrot.slane %v4849_v13, 2  ;;  %v2134_v13 = vrot.slane %v5023_v14, 1  ;;  %v2394_v38 = vrot.slane %v5023_v14, 3 }
 0x22f   :  { %1434 = vmatpush.bf16.msrb.mxu1 %v4021_v63  ;;  %1951 = vmatpush.bf16.msrb.mxu0 %v4073_v19  ;;  %v4089_v63 = vld [vmem:[%s5182_s5 + $0x350] sm:$0xff]  ;;  %v2264_v19 = vrot.slane %v5023_v14, 2 }
 0x231   :  { %1693 = vmatpush.bf16.msra.mxu2 %v4047_v20  ;;  %2081 = vmatpush.bf16.msrb.mxu3 %v4084_v1  ;;  %v4095_v20 = vld [vmem:[%s5182_s5 + $0x380] sm:$0xff]  ;;  %v4088_v1 = vld [vmem:[%s5182_s5 + $0x348] sm:$0xff] }
 0x233   :  { %1435 = vmatpush.bf16.msrb.mxu1 %v4020_v61  ;;  %1952 = vmatpush.bf16.msrb.mxu0 %v4072_v22  ;;  %v4120_v61 = vld [vmem:[%s5182_s5 + $0x448] sm:$0xff]  ;;  %v4094_v22 = vld [vmem:[%s5182_s5 + $0x378] sm:$0xff] }
 0x234   :  { %3282 = vmatmul.msk.bf16.vlgmr.msrb.gmra.mxu2 %vm149_vm1, %v1352_v10  ;;  %v4110_v10 = vld [vmem:[%s5182_s5 + $0x3f8] sm:$0xff] }
 0x235   :  { %1694 = vmatpush.bf16.msra.mxu2 %v4046_v62  ;;  %2082 = vmatpush.bf16.msrb.mxu3 %v4083_v23  ;;  %v4087_v62 = vld [vmem:[%s5182_s5 + $0x340] sm:$0xff] }
 0x236   :  { %v4119_v23 = vld [vmem:[%s5182_s5 + $0x440] sm:$0xff] }
 0x237   :  { %1436 = vmatpush.bf16.msrb.mxu1 %v4019_v26  ;;  %1953 = vmatpush.bf16.msrb.mxu0 %v4071_v0  ;;  %v4093_v26 = vld [vmem:[%s5182_s5 + $0x370] sm:$0xff]  ;;  %v4118_v0 = vld [vmem:[%s5182_s5 + $0x438] sm:$0xff] }
 0x238   :  { %3501 = vmatmul.msk.bf16.vlgmr.msra.gmra.mxu3 %vm149_vm1, %v1743_v30  ;;  %v4126_v30 = vld [vmem:[%s5182_s5 + $0x478] sm:$0xff] }
 0x239   :  { %1695 = vmatpush.bf16.msra.mxu2 %v4045_v24  ;;  %2083 = vmatpush.bf16.msrb.mxu3 %v4082_v28  ;;  %v4117_v24 = vld [vmem:[%s5182_s5 + $0x430] sm:$0xff]  ;;  %v4108_v28 = vld [vmem:[%s5182_s5 + $0x3e8] sm:$0xff] }
 0x23a   :  { %1437 = vmatmul.bf16.vlgmr.msrb.gmra.mxu1 %v1351_v3  ;;  %3428 = vmatmul.msk.bf16.vlgmr.msra.gmra.mxu0 %vm149_vm1, %v1613_v17  ;;  %v4116_v3 = vld [vmem:[%s5182_s5 + $0x428] sm:$0xff]  ;;  %v4125_v17 = vld [vmem:[%s5182_s5 + $0x470] sm:$0xff] }
 0x23b   :  { %1820 = vmatpush.bf16.msra.mxu1 %v4062_v7  ;;  %1954 = vmatpush.bf16.msrb.mxu0 %v4070_v55  ;;  %v4109_v7 = vld [vmem:[%s5182_s5 + $0x3f0] sm:$0xff]  ;;  %v4107_v55 = vld [vmem:[%s5182_s5 + $0x3e0] sm:$0xff] }
 0x23d   :  { %1696 = vmatpush.bf16.msra.mxu2 %v4044_v31  ;;  %2084 = vmatpush.bf16.msrb.mxu3 %v4081_v2  ;;  %v4115_v31 = vld [vmem:[%s5182_s5 + $0x420] sm:$0xff]  ;;  %v4106_v2 = vld [vmem:[%s5182_s5 + $0x3d8] sm:$0xff] }
 0x23f   :  { %1821 = vmatpush.bf16.msra.mxu1 %v4061_v59  ;;  %1955 = vmatpush.bf16.msrb.mxu0 %v4069_v34  ;;  %v2133_v59 = vrot.slane %v4976_v25, 1  ;;  %v2393_v34 = vrot.slane %v4976_v25, 3 }
 0x241   :  { %1697 = vmatpush.bf16.msra.mxu2 %v4043_v36  ;;  %2085 = vmatpush.bf16.msrb.mxu3 %v4080_v37  ;;  %v4123_v36 = vld [vmem:[%s5182_s5 + $0x460] sm:$0xff] }
 0x242   :  { %v4103_v37 = vld [vmem:[%s5182_s5 + $0x3c0] sm:$0xff] }
 0x243   :  { %1822 = vmatpush.bf16.msra.mxu1 %v4060_v35  ;;  %1956 = vmatpush.bf16.msrb.mxu0 %v4068_v39  ;;  %v4105_v35 = vld [vmem:[%s5182_s5 + $0x3d0] sm:$0xff]  ;;  %v2263_v39 = vrot.slane %v4976_v25, 2 }
 0x244   :  { %1698 = vmatmul.bf16.vlgmr.msra.gmra.mxu2 %v1612_v44 }
 0x245   :  { %1967 = vmatpush.bf16.msrb.mxu2 %v4078_v21  ;;  %2086 = vmatpush.bf16.msrb.mxu3 %v4079_v4  ;;  %v4104_v21 = vld [vmem:[%s5182_s5 + $0x3c8] sm:$0xff] }
 0x247   :  { %1823 = vmatpush.bf16.msra.mxu1 %v4059_v40  ;;  %1957 = vmatpush.bf16.msrb.mxu0 %v4067_v47 }
 0x248   :  { %2087 = vmatmul.bf16.vlgmr.msrb.gmra.mxu3 %v4976_v25 }
 0x249   :  { %1968 = vmatpush.bf16.msrb.mxu2 %v4077_v41  ;;  %2358 = vmatpush.bf16.msra.mxu3 %v4114_v45 }
 0x24a   :  { %1958 = vmatmul.bf16.vlgmr.msrb.gmra.mxu0 %v1872_v15 }
 0x24b   :  { %1824 = vmatpush.bf16.msra.mxu1 %v4058_v33  ;;  %2228 = vmatpush.bf16.msra.mxu0 %v4102_v48 }
 0x24d   :  { %1969 = vmatpush.bf16.msrb.mxu2 %v4076_v12  ;;  %2359 = vmatpush.bf16.msra.mxu3 %v4113_v8 }
 0x24f   :  { %1825 = vmatpush.bf16.msra.mxu1 %v4057_v49  ;;  %2229 = vmatpush.bf16.msra.mxu0 %v4101_v50 }
 0x251   :  { %1970 = vmatpush.bf16.msrb.mxu2 %v4075_v51  ;;  %2360 = vmatpush.bf16.msra.mxu3 %v4112_v53 }
 0x253   :  { %1826 = vmatpush.bf16.msra.mxu1 %v4056_v54  ;;  %2230 = vmatpush.bf16.msra.mxu0 %v4100_v56 }
 0x254   :  { %3574 = vmatmul.msk.bf16.vlgmr.msrb.gmra.mxu2 %vm149_vm1, %v1873_v16 }
 0x255   :  { %2211 = vmatpush.bf16.msra.mxu2 %v4098_v52  ;;  %2361 = vmatpush.bf16.msra.mxu3 %v4111_v5 }
 0x257   :  { %1827 = vmatpush.bf16.msra.mxu1 %v4055_v6  ;;  %2231 = vmatpush.bf16.msra.mxu0 %v4099_v46 }
 0x258   :  { %3793 = vmatmul.msk.bf16.vlgmr.msra.gmra.mxu3 %vm149_vm1, %v2264_v19 }
 0x259   :  { %2212 = vmatpush.bf16.msra.mxu2 %v4097_v58 }
 0x25a   :  { %1828 = vmatmul.bf16.vlgmr.msra.gmra.mxu1 %v1742_v60  ;;  %3720 = vmatmul.msk.bf16.vlgmr.msra.gmra.mxu0 %vm149_vm1, %v2134_v13 }
 0x25b   :  { %2096 = vmatpush.bf16.msrb.mxu1 %v4090_v9  ;;  %2471 = vmatpush.bf16.msrb.mxu0 %v4122_v11 }
 0x25d   :  { %2213 = vmatpush.bf16.msra.mxu2 %v4096_v43 }
 0x25f   :  { %2097 = vmatpush.bf16.msrb.mxu1 %v4089_v63  ;;  %2472 = vmatpush.bf16.msrb.mxu0 %v4121_v18 }
 0x261   :  { %2214 = vmatpush.bf16.msra.mxu2 %v4095_v20 }
 0x263   :  { %2098 = vmatpush.bf16.msrb.mxu1 %v4088_v1  ;;  %2473 = vmatpush.bf16.msrb.mxu0 %v4120_v61 }
 0x265   :  { %2215 = vmatpush.bf16.msra.mxu2 %v4094_v22 }
 0x267   :  { %2099 = vmatpush.bf16.msrb.mxu1 %v4087_v62  ;;  %2474 = vmatpush.bf16.msrb.mxu0 %v4119_v23 }
 0x269   :  { %2216 = vmatpush.bf16.msra.mxu2 %v4093_v26  ;;  %v4130_v26 = vld [vmem:[%s5183_s6 + $0x18] sm:$0xff] }
 0x26a   :  { %3647 = vmatmul.msk.bf16.vlgmr.msrb.gmra.mxu1 %vm149_vm1, %v5023_v14  ;;  %2541 = vmatpush.bf16.msrb.mxu3 %v4130_v26 }
 0x26b   :  { %2341 = vmatpush.bf16.msra.mxu1 %v4110_v10  ;;  %2475 = vmatpush.bf16.msrb.mxu0 %v4118_v0 }
 0x26d   :  { %2217 = vmatpush.bf16.msra.mxu2 %v4092_v27  ;;  %v4129_v27 = vld [vmem:[%s5183_s6 + $0x10] sm:$0xff] }
 0x26e   :  { %2542 = vmatpush.bf16.msrb.mxu3 %v4129_v27 }
 0x26f   :  { %2342 = vmatpush.bf16.msra.mxu1 %v4109_v7  ;;  %2476 = vmatpush.bf16.msrb.mxu0 %v4117_v24 }
 0x271   :  { %2218 = vmatpush.bf16.msra.mxu2 %v4091_v29  ;;  %v4128_v29 = vld [vmem:[%s5183_s6 + $0x8] sm:$0xff] }
 0x272   :  { %2543 = vmatpush.bf16.msrb.mxu3 %v4128_v29 }
 0x273   :  { %2343 = vmatpush.bf16.msra.mxu1 %v4108_v28  ;;  %2477 = vmatpush.bf16.msrb.mxu0 %v4116_v3 }
 0x274   :  { %2219 = vmatmul.bf16.vlgmr.msra.gmra.mxu2 %v2133_v59  ;;  %v4134_v59 = vld [vmem:[%s5183_s6 + $0x38] sm:$0xff] }
 0x275   :  { %2488 = vmatpush.bf16.msrb.mxu2 %v4126_v30 }
 0x277   :  { %2344 = vmatpush.bf16.msra.mxu1 %v4107_v55  ;;  %2478 = vmatpush.bf16.msrb.mxu0 %v4115_v31  ;;  %v4127_v55 = vld [vmem:[%s5183_s6] sm:$0xff] }
 0x278   :  { %2544 = vmatpush.bf16.msrb.mxu3 %v4127_v55 }
 0x279   :  { %2489 = vmatpush.bf16.msrb.mxu2 %v4125_v17  ;;  %v4133_v17 = vld [vmem:[%s5183_s6 + $0x30] sm:$0xff] }
 0x27a   :  { %2479 = vmatmul.bf16.vlgmr.msrb.gmra.mxu0 %v2393_v34 }
 0x27b   :  { %2345 = vmatpush.bf16.msra.mxu1 %v4106_v2  ;;  %v4132_v2 = vld [vmem:[%s5183_s6 + $0x28] sm:$0xff] }
 0x27d   :  { %2490 = vmatpush.bf16.msrb.mxu2 %v4124_v32 }
 0x27f   :  { %2346 = vmatpush.bf16.msra.mxu1 %v4105_v35 }
 0x281   :  { %2491 = vmatpush.bf16.msrb.mxu2 %v4123_v36 }
 0x283   :  { %2347 = vmatpush.bf16.msra.mxu1 %v4104_v21 }
 0x284   :  { %3866 = vmatmul.msk.bf16.vlgmr.msrb.gmra.mxu2 %vm149_vm1, %v2394_v38 }
 0x287   :  { %2348 = vmatpush.bf16.msra.mxu1 %v4103_v37 }
 0x28a   :  { %2349 = vmatmul.bf16.vlgmr.msra.gmra.mxu1 %v2263_v39 }
 0x28b   :  { %2591 = vmatpush.bf16.msrb.mxu1 %v4134_v59 }
 0x28f   :  { %2592 = vmatpush.bf16.msrb.mxu1 %v4133_v17 }
 0x293   :  { %2593 = vmatpush.bf16.msrb.mxu1 %v4132_v2 }
 0x297   :  { %v1078_v40 = vpop.f32.mrf.mxu1  ;;  %v1091_v41 = vpop.f32.mrf.mxu2 }
 0x298   :  { %v1092_v4 = vadd.f32 %v1091_v41, %v1078_v40  ;;  %v1308_v42 = vpop.f32.mrf.mxu0 }
 0x29b   :  { %v1179_v44 = vpop.f32.mrf.mxu3 }
 0x29c   :  { %v1180_v45 = vadd.f32 %v1179_v44, %v1092_v4 }
 0x29f   :  { %v1080_v47 = vpop.f32.mrf.mxu1  ;;  %v1093_v33 = vpop.f32.mrf.mxu2 }
 0x2a0   :  { %v1310_v48 = vpop.f32.mrf.mxu0 }
 0x2a3   :  { %v1181_v12 = vpop.f32.mrf.mxu3 }
 0x2a7   :  { %v1192_v8 = vpop.f32.mrf.mxu1  ;;  %v1321_v49 = vpop.f32.mrf.mxu2 }
 0x2a8   :  { %v1193_v15 = vadd.f32 %v1192_v8, %v1180_v45  ;;  %v1322_v50 = vadd.f32 %v1321_v49, %v1308_v42  ;;  %v1580_v51 = vpop.f32.mrf.mxu0  ;;  %v2498_v49 = vld [vmem:[%s5179_s2 + $0x3] ss:$0 sm:$0xff] }
 0x2aa   :  { %v1325_v52 = vadd.f32 %v1322_v50, %v1193_v15 }
 0x2ab   :  { %v1567_v53 = vpop.f32.mrf.mxu3 }
 0x2ac   :  { %v1581_v54 = vadd.f32 %v1580_v51, %v1567_v53 }
 0x2af   :  { %v1194_v25 = vpop.f32.mrf.mxu1  ;;  %v1323_v56 = vpop.f32.mrf.mxu2 }
 0x2b0   :  { %v1582_v57 = vpop.f32.mrf.mxu0  ;;  %v4138_v25 = vld [vmem:[%s5183_s6 + $0x58] sm:$0xff]  ;;  %v4137_v56 = vld [vmem:[%s5183_s6 + $0x50] sm:$0xff] }
 0x2b1   :  { %2645 = vmatpush.bf16.msra.mxu2 %v4138_v25  ;;  %v2509_v57 = vld [vmem:[%s5179_s2 + $0x4] ss:$0 sm:$0xff] }
 0x2b3   :  { %v1569_v58 = vpop.f32.mrf.mxu3 }
 0x2b5   :  { %2646 = vmatpush.bf16.msra.mxu2 %v4137_v56 }
 0x2b7   :  { %v1438_v5 = vpop.f32.mrf.mxu1  ;;  %v1451_v6 = vpop.f32.mrf.mxu2 }
 0x2b8   :  { %v1452_v46 = vadd.f32 %v1451_v6, %v1438_v5  ;;  %v1712_v9 = vpop.f32.mrf.mxu0 }
 0x2ba   :  { %v1455_v11 = vadd.f32 %v1452_v46, %v1325_v52 }
 0x2bb   :  { %v1842_v14 = vpop.f32.mrf.mxu3 }
 0x2bc   :  { %v1584_v16 = vadd.f32 %v1581_v54, %v1455_v11  ;;  %v4131_v54 = vld [vmem:[%s5183_s6 + $0x20] sm:$0xff]  ;;  %v4136_v11 = vld [vmem:[%s5183_s6 + $0x48] sm:$0xff] }
 0x2bd   :  { %2594 = vmatpush.bf16.msrb.mxu1 %v4131_v54  ;;  %2647 = vmatpush.bf16.msra.mxu2 %v4136_v11 }
 0x2bf   :  { %v1440_v43 = vpop.f32.mrf.mxu1  ;;  %v1453_v60 = vpop.f32.mrf.mxu2 }
 0x2c0   :  { %v1714_v63 = vpop.f32.mrf.mxu0  ;;  %v2601_v43 = vld [vmem:[%s5179_s2 + $0x5] ss:$0 sm:$0xff] }
 0x2c3   :  { %v1844_v18 = vpop.f32.mrf.mxu3 }
 0x2c7   :  { %v1699_v19 = vpop.f32.mrf.mxu2 }
 0x2c8   :  { %v1959_v20 = vpop.f32.mrf.mxu0  ;;  %v1713_v35 = vadd.f32 %v1712_v9, %v1699_v19 }
 0x2ca   :  { %v1716_v21 = vadd.f32 %v1713_v35, %v1584_v16 }
 0x2cb   :  { %v2088_v13 = vpop.f32.mrf.mxu3 }
 0x2cf   :  { %v1701_v1 = vpop.f32.mrf.mxu2 }
 0x2d0   :  { %v1961_v61 = vpop.f32.mrf.mxu0 }
 0x2d3   :  { %v2090_v62 = vpop.f32.mrf.mxu3 }
 0x2d7   :  { %v1829_v22 = vpop.f32.mrf.mxu1  ;;  %v1972_v23 = vpop.f32.mrf.mxu2 }
 0x2d8   :  { %v2233_v10 = vpop.f32.mrf.mxu0  ;;  %v1843_v36 = vadd.f32 %v1842_v14, %v1829_v22  ;;  %v1973_v37 = vadd.f32 %v1972_v23, %v1959_v20  ;;  %v4135_v14 = vld [vmem:[%s5183_s6 + $0x40] sm:$0xff] }
 0x2d9   :  { %2648 = vmatpush.bf16.msra.mxu2 %v4135_v14 }
 0x2da   :  { %v1846_v39 = vadd.f32 %v1843_v36, %v1716_v21 }
 0x2db   :  { %v2363_v7 = vpop.f32.mrf.mxu3 }
 0x2dc   :  { %v1976_v4 = vadd.f32 %v1973_v37, %v1846_v39 }
 0x2df   :  { %v1831_v0 = vpop.f32.mrf.mxu1  ;;  %v1974_v24 = vpop.f32.mrf.mxu2 }
 0x2e0   :  { %v2235_v28 = vpop.f32.mrf.mxu0 }
 0x2e3   :  { %v2365_v30 = vpop.f32.mrf.mxu3 }
 0x2e7   :  { %v2101_v3 = vpop.f32.mrf.mxu1 }
 0x2e8   :  { %v2102_v40 = vadd.f32 %v2101_v3, %v2088_v13  ;;  %v2613_v13 = vld [vmem:[%s5179_s2 + $0x6] ss:$0 sm:$0xff] }
 0x2ea   :  { %v2105_v44 = vadd.f32 %v2102_v40, %v1976_v4 }
 0x2ef   :  { %v2103_v31 = vpop.f32.mrf.mxu1 }
 0x2f7   :  { %v2220_v32 = vpop.f32.mrf.mxu2  ;;  %v2480_v34 = vpop.f32.mrf.mxu0 }
 0x2f8   :  { %v2234_v42 = vadd.f32 %v2233_v10, %v2220_v32 }
 0x2fa   :  { %v2237_v47 = vadd.f32 %v2234_v42, %v2105_v44 }
 0x2ff   :  { %v2222_v38 = vpop.f32.mrf.mxu2  ;;  %v2482_v41 = vpop.f32.mrf.mxu0 }
 0x307   :  { %v2350_v45 = vpop.f32.mrf.mxu1  ;;  %v2493_v48 = vpop.f32.mrf.mxu2 }
 0x308   :  { %v2364_v33 = vadd.f32 %v2363_v7, %v2350_v45  ;;  %v2494_v8 = vadd.f32 %v2493_v48, %v2480_v34 }
 0x30a   :  { %v2367_v12 = vadd.f32 %v2364_v33, %v2237_v47 }
 0x30c   :  { %v2497_v15 = vadd.f32 %v2494_v8, %v2367_v12 }
 0x30e   :  { %v2499_v50 = vadd.f32 %v2498_v49, %v2497_v15 }
 0x30f   :  { %v2352_v51 = vpop.f32.mrf.mxu1  ;;  %v2495_v53 = vpop.f32.mrf.mxu2 }
 0x310   :  { %v2500_v52 = vpack.c.bf16 %v2499_v50, %v2499_v50 }
 0x312   :  { %3883 = vmatmul.msk.bf16.vlgmr.msrb.gmra.mxu3 %vm149_vm1, %v2500_v52 }
 0x395   :  { %v2546_v58 = vpop.f32.mrf.mxu3 }
 0x396   :  { %v2547_v5 = vadd.f32 %v2546_v58, %v2509_v57 }
 0x398   :  { %v2550_v6 = vmax.f32 %v2547_v5, 0.0 }
 0x39a   :  { %v2551_v46 = vpack.c.bf16 %v2550_v6, %v2550_v6 }
 0x39c   :  { %3900 = vmatmul.msk.bf16.vlgmr.msrb.gmra.mxu1 %vm149_vm1, %v2551_v46 }
 0x39d   :  { %v2548_v9 = vpop.f32.mrf.mxu3 }
 0x419   :  { %v2596_v16 = vpop.f32.mrf.mxu1 }
 0x41a   :  { %v2600_v60 = vadd.f32 %v2596_v16, %v2499_v50 }
 0x41c   :  { %v2602_v63 = vadd.f32 %v2601_v43, %v2600_v60 }
 0x41e   :  { %v2603_v18 = vmax.f32 %v2602_v63, 0.0 }
 0x420   :  { %v2604_v19 = vpack.c.bf16 %v2603_v18, %v2603_v18 }
 0x421   :  { %v2598_v20 = vpop.f32.mrf.mxu1 }
 0x422   :  { %3917 = vmatmul.msk.bf16.vlgmr.msra.gmra.mxu2 %vm149_vm1, %v2604_v19 }
 0x4a5   :  { %v2650_v1 = vpop.f32.mrf.mxu2 }
 0x4a6   :  { %v2651_v61 = vadd.f32 %v2650_v1, %v2613_v13 }
 0x4a8   :  { %2655 = vst.msk [vmem:[#allocation4] sm:$0x3] %vm2654_vm5, %v2651_v61 }
 0x4a9   :  { %2666 = dma.vmem_to_hbm [thread:$0]  %s2662_s14, 32, %s2664_s16, [#allocation5]  }
 0x4ad   :  { %v2652_v22 = vpop.f32.mrf.mxu2 }
 0x4ae   :  { %4165 = dma.done.wait [#allocation5], 32  }
 0x4af   :  { %4166 = vsyncadd [#allocation5], 4294967264 }
 0x4b0   :  { %2671 = vsyncpa [#allocation5], 1 }

</bundles_post_ra>
